<compile_context>
chip_gen: v7x
topology: tpu7x:2x2x1
jax: 0.10.0
libtpu: 0.0.40
codegen_flags: <defaults>
</compile_context>

<pallas_src>
import functools

import jax
import jax.numpy as jnp
from jax.experimental import pallas as pl
from jax.experimental.pallas import tpu as pltpu


def _round_up(x, m):
    return ((x + m - 1) // m) * m


# ----------------------------------------------------------------------------
# Pallas kernel: fused DeepFM forward (linear/wide + FM + DNN + sigmoid head)
# ----------------------------------------------------------------------------
def deepfm_kernel(
    act_ref,        # [TB, W]   slab = [lin_sparse | dense | fm_flat | 0-pad], f32
    wide_ref,       # [1,  W]   [ones(S) | lin_dense_w | zeros], f32
    fm_mask_ref,    # [1,  W]   1.0 on the fm_flat lane range, else 0, f32
    sel_ref,        # [W,  E]   0/1 selector: fm lane (s,e) -> column e, f32
    w1_ref,         # [W,  H1]  fused first DNN layer (zero rows outside DNN input), bf16
    b1_ref,         # [1,  H1]  f32
    w2_ref,         # [H1, H2]  bf16
    b2_ref,         # [1,  H2]  f32
    w3_ref,         # [1,  H2]  dnn_linear weight (row layout, f32, no bias)
    pbias_ref,      # [1,  1]   PredictionLayer bias (SMEM scalar)
    out_ref,        # [TB, 1]
):
    slab = act_ref[...]                                               # [TB, W] f32

    # ---- wide / linear part: ONE VPU multiply + XLU row-reduce ---------------
    linear_logit = jnp.sum(slab * wide_ref[...], axis=-1, keepdims=True)

    # ---- FM second-order term (kept in f32) ----------------------------------
    # square_of_sum: per-embedding-dim feature sum via a tiny f32 MXU selector
    # matmul (replaces the unrolled lane-slice loop); sum_of_square: mask the
    # non-fm lanes and do one full-width row-reduce (no unaligned slices).
    sum_emb = jnp.dot(slab, sel_ref[...],
                      preferred_element_type=jnp.float32)             # [TB, E]
    square_of_sum = jnp.sum(sum_emb * sum_emb, axis=-1, keepdims=True)
    sum_of_square = jnp.sum(slab * slab * fm_mask_ref[...],
                            axis=-1, keepdims=True)
    fm_logit = 0.5 * (square_of_sum - sum_of_square)                  # [TB, 1]

    # ---- DNN: single fused bf16 MXU matmul per layer, f32 accumulate ---------
    h1 = jnp.dot(slab.astype(w1_ref.dtype), w1_ref[...],
                 preferred_element_type=jnp.float32)
    h1 = jnp.maximum(h1 + b1_ref[...], 0.0)                           # relu, f32
    h2 = jnp.dot(h1.astype(w2_ref.dtype), w2_ref[...],
                 preferred_element_type=jnp.float32)
    h2 = jnp.maximum(h2 + b2_ref[...], 0.0)                           # relu, f32
    # dnn_linear (out_dim = 1): VPU multiply + row-reduce (no N=1 MXU dot).
    dnn_logit = jnp.sum(h2 * w3_ref[...], axis=-1, keepdims=True)     # [TB, 1]

    # ---- combine + PredictionLayer (binary -> sigmoid) -----------------------
    logit = linear_logit + fm_logit + dnn_logit + pbias_ref[0, 0]
    out_ref[...] = jax.nn.sigmoid(logit)
    # TODO(synk): a lane-dense (1, TB) output layout would avoid masked stores,
    # but needs a column->row relayout in-kernel; output is only 4 B/row so the
    # win is negligible here and is skipped to keep lowering simple.


# ----------------------------------------------------------------------------
# Wrapper: layout plumbing + pallas_call with a pipelined, parallel batch grid
# ----------------------------------------------------------------------------
def deepfm_forward(lin_sparse, dense, lin_dense_w, fm_flat,
                   w1, b1, w2, b2, w3, pred_bias,
                   *, block_b=None, mxu_dtype=jnp.bfloat16):
    """Fused DeepFM forward. Embedding gathers are done by the caller."""
    B, S = lin_sparse.shape
    D = dense.shape[1]
    SE = fm_flat.shape[1]
    E = SE // S
    H1 = w1.shape[1]
    H2 = w2.shape[1]

    # ---- batch tile: target 512 rows, but keep >= 2 tiles for v7x's 2 TCs ----
    if block_b is None:
        target = 512
        half = _round_up(pl.cdiv(B, 2), 8)
        block_b = max(8, min(_round_up(target, 8), half))
    grid_b = pl.cdiv(B, block_b)
    Bp = grid_b * block_b

    # ---- lane-dense activation slab: [lin_sparse | dense | fm_flat | pad] ----
    W0 = S + D + SE
    W = _round_up(W0, 128)
    pad_w = W - W0
    slab = jnp.concatenate(
        [lin_sparse.astype(jnp.float32), dense.astype(jnp.float32),
         fm_flat.astype(jnp.float32)], axis=1)
    if pad_w:
        slab = jnp.pad(slab, ((0, 0), (0, pad_w)))
    if Bp != B:                                           # pad batch tiles
        slab = jnp.pad(slab, ((0, Bp - B), (0, 0)))

    # ---- resident parameter plumbing (single copies, stay VMEM-resident) -----
    # wide row: ones over sparse-linear lanes, lin_dense_w over dense lanes.
    wide_row = jnp.concatenate(
        [jnp.ones((1, S), jnp.float32),
         lin_dense_w.reshape(1, D).astype(jnp.float32),
         jnp.zeros((1, SE + pad_w), jnp.float32)], axis=1)            # [1, W]
    # fm mask over the fm_flat lane range.
    fm_mask = jnp.concatenate(
        [jnp.zeros((1, S + D), jnp.float32),
         jnp.ones((1, SE), jnp.float32),
         jnp.zeros((1, pad_w), jnp.float32)], axis=1)                 # [1, W]
    # selector: lane (S + D + s*E + e) -> embedding-dim column e.
    sel = jnp.zeros((W, E), jnp.float32)
    sel = sel.at[S + D + jnp.arange(SE), jnp.arange(SE) % E].set(1.0)
    # fused first DNN layer: zero rows for lin_sparse / pad lanes, dense rows,
    # then embedding rows (original w1 layout is [fm_flat rows ; dense rows]).
    w1_fused = jnp.zeros((W, H1), jnp.float32)
    w1_fused = w1_fused.at[S:S + D, :].set(w1[SE:SE + D, :])
    w1_fused = w1_fused.at[S + D:S + D + SE, :].set(w1[:SE, :])
    w1_fused = w1_fused.astype(mxu_dtype)
    w2_c = w2.astype(mxu_dtype)
    b1_r = b1.reshape(1, H1).astype(jnp.float32)
    b2_r = b2.reshape(1, H2).astype(jnp.float32)
    w3_row = w3.reshape(1, H2).astype(jnp.float32)
    pbias = pred_bias.reshape(1, 1).astype(jnp.float32)

    # ---- explicit scoped-VMEM budget (v5e default is only 16 MiB) ------------
    act_blk = block_b * W * 4
    out_blk = block_b * 1 * 4
    resident = (2 * W * 4 + W * E * 4                    # wide, mask, sel (f32)
                + (W * H1 + H1 * H2) * 2                 # bf16 weights
                + (H1 + 2 * H2) * 4)                     # b1, b2, w3
    needed = 2 * (act_blk + out_blk) + 2 * resident      # double-buffered
    vmem_limit = int(min(100 << 20, max(32 << 20, 4 * needed)))

    def act(width):       # per-batch-tile activation block
        return pl.BlockSpec((block_b, width), lambda i: (i, 0))

    def resident_spec(shape):   # same block every step -> stays in VMEM
        # TODO(synk): at production H1/H2 sizes, pipeline_mode=pl.Buffered(1)
        # here would reclaim the unused second buffer of constant-index weights.
        return pl.BlockSpec(shape, lambda i: (0, 0))

    out = pl.pallas_call(
        deepfm_kernel,
        out_shape=jax.ShapeDtypeStruct((Bp, 1), jnp.float32),
        grid_spec=pltpu.PrefetchScalarGridSpec(
            num_scalar_prefetch=0,
            grid=(grid_b,),
            in_specs=[
                act(W),                         # slab         [TB, W]
                resident_spec((1, W)),          # wide_row
                resident_spec((1, W)),          # fm_mask
                resident_spec((W, E)),          # selector
                resident_spec((W, H1)),         # w1_fused (bf16)
                resident_spec((1, H1)),         # b1
                resident_spec((H1, H2)),        # w2       (bf16)
                resident_spec((1, H2)),         # b2
                resident_spec((1, H2)),         # w3_row
                pl.BlockSpec(memory_space=pltpu.MemorySpace.SMEM),  # pred bias
            ],
            out_specs=pl.BlockSpec((block_b, 1), lambda i: (i, 0)),
        ),
        compiler_params=pltpu.CompilerParams(
            dimension_semantics=("parallel",),   # batch tiles across TensorCores
            vmem_limit_bytes=vmem_limit),
    )(slab, wide_row, fm_mask, sel, w1_fused, b1_r, w2_c, b2_r, w3_row, pbias)
    return out[:B]


# ----------------------------------------------------------------------------
# Demo: parameters + JAX glue for embedding lookups + reference check
# ----------------------------------------------------------------------------
if __name__ == "__main__":
    # Small, module-consistent shapes (dnn_hidden_units uses the module default).
    B = 256                               # batch -> 2 grid tiles of 128
    VOCABS = [10, 20, 30, 40]             # 4 sparse features
    S = len(VOCABS)
    E = 8                                 # embedding_dim (FM / DNN embeddings)
    D = 4                                 # total dense dimension
    H1, H2 = 256, 128                     # dnn_hidden_units=(256, 128)
    INPUT_DIM = S * E + D                 # compute_input_dim
    INIT_STD = 1e-4

    key = jax.random.PRNGKey(0)
    ks = iter(jax.random.split(key, 32))

    # FM/DNN embedding tables [vocab_i, E]; wide/linear tables [vocab_i, 1].
    dnn_emb_tables = [INIT_STD * jax.random.normal(next(ks), (v, E), jnp.float32)
                      for v in VOCABS]
    lin_emb_tables = [INIT_STD * jax.random.normal(next(ks), (v, 1), jnp.float32)
                      for v in VOCABS]
    lin_dense_w = INIT_STD * jax.random.normal(next(ks), (D, 1), jnp.float32)
    w1 = INIT_STD * jax.random.normal(next(ks), (INPUT_DIM, H1), jnp.float32)
    b1 = jnp.zeros((1, H1), jnp.float32)
    w2 = INIT_STD * jax.random.normal(next(ks), (H1, H2), jnp.float32)
    b2 = jnp.zeros((1, H2), jnp.float32)
    w3 = INIT_STD * jax.random.normal(next(ks), (H2, 1), jnp.float32)   # no bias
    pred_bias = jnp.zeros((1, 1), jnp.float32)                          # PredictionLayer

    # Input X: [B, S + D] — integer-valued sparse ids followed by dense floats.
    sparse_ids = jnp.stack(
        [jax.random.randint(next(ks), (B,), 0, v) for v in VOCABS], axis=1)
    dense_vals = jax.random.uniform(next(ks), (B, D), jnp.float32)
    X = jnp.concatenate([sparse_ids.astype(jnp.float32), dense_vals], axis=1)

    # TODO(synk): embedding gather kept in plain JAX; production-scale vocab
    # tables would use scalar-prefetched ids + DMA gather inside the pipeline.
    ids = X[:, :S].astype(jnp.int32)                            # [B, S]
    dense = X[:, S:]                                            # [B, D]
    fm_emb = jnp.stack(
        [jnp.take(tbl, ids[:, i], axis=0) for i, tbl in enumerate(dnn_emb_tables)],
        axis=1)                                                 # [B, S, E]
    lin_sparse = jnp.concatenate(
        [jnp.take(tbl, ids[:, i], axis=0) for i, tbl in enumerate(lin_emb_tables)],
        axis=1)                                                 # [B, S]
    fm_flat = fm_emb.reshape(B, S * E)                          # single embedding copy

    # --- run the fused Pallas kernel ------------------------------------------
    y_pred = deepfm_forward(lin_sparse, dense, lin_dense_w, fm_flat,
                            w1, b1, w2, b2, w3, pred_bias)
    y_pred = jax.block_until_ready(y_pred)
    assert y_pred.shape == (B, 1) and y_pred.dtype == jnp.float32

    # --- plain-JAX f32 reference of the DeepFM forward semantics --------------
    linear_ref = jnp.sum(lin_sparse, axis=-1, keepdims=True) + dense @ lin_dense_w
    sum_emb = jnp.sum(fm_emb, axis=1)
    fm_ref = 0.5 * jnp.sum(sum_emb * sum_emb - jnp.sum(fm_emb * fm_emb, axis=1),
                           axis=-1, keepdims=True)
    x_ref = jnp.concatenate([fm_flat, dense], axis=1)
    h1_ref = jnp.maximum(x_ref @ w1 + b1, 0.0)
    h2_ref = jnp.maximum(h1_ref @ w2 + b2, 0.0)
    y_ref = jax.nn.sigmoid(linear_ref + fm_ref + h2_ref @ w3 + pred_bias)
    max_err = float(jnp.max(jnp.abs(y_pred - y_ref)))
    assert max_err < 1e-3, f"mismatch vs reference: {max_err}"

    print("KERNEL_OK")
</pallas_src>

<mosaic_0001>
module attributes {stable_mosaic.version = 11 : i64} {
  func.func @deepfm_kernel(%arg0: i32, %arg1: memref<128x128xf32, #tpu.memory_space<vmem>>, %arg2: memref<1x128xf32, #tpu.memory_space<vmem>>, %arg3: memref<1x128xf32, #tpu.memory_space<vmem>>, %arg4: memref<128x8xf32, #tpu.memory_space<vmem>>, %arg5: memref<128x256xbf16, #tpu.memory_space<vmem>>, %arg6: memref<1x256xf32, #tpu.memory_space<vmem>>, %arg7: memref<256x128xbf16, #tpu.memory_space<vmem>>, %arg8: memref<1x128xf32, #tpu.memory_space<vmem>>, %arg9: memref<1x128xf32, #tpu.memory_space<vmem>>, %arg10: memref<1x1xf32, #tpu.memory_space<smem>>, %arg11: memref<128x1xf32, #tpu.memory_space<vmem>>) attributes {dimension_semantics = [#tpu.dimension_semantics<parallel>], iteration_bounds = array<i64: 2>, scalar_prefetch = 0 : i64, scratch_operands = 0 : i64, tpu.core_type = #tpu.core_type<tc>, window_params = [{transform_indices = @transform_0, window_bounds = array<i64: 128, 128>}, {pipeline_mode = #tpu.pipeline_mode<synchronous>, transform_indices = @transform_1, window_bounds = array<i64: 1, 128>}, {pipeline_mode = #tpu.pipeline_mode<synchronous>, transform_indices = @transform_2, window_bounds = array<i64: 1, 128>}, {pipeline_mode = #tpu.pipeline_mode<synchronous>, transform_indices = @transform_3, window_bounds = array<i64: 128, 8>}, {pipeline_mode = #tpu.pipeline_mode<synchronous>, transform_indices = @transform_4, window_bounds = array<i64: 128, 256>}, {pipeline_mode = #tpu.pipeline_mode<synchronous>, transform_indices = @transform_5, window_bounds = array<i64: 1, 256>}, {pipeline_mode = #tpu.pipeline_mode<synchronous>, transform_indices = @transform_6, window_bounds = array<i64: 256, 128>}, {pipeline_mode = #tpu.pipeline_mode<synchronous>, transform_indices = @transform_7, window_bounds = array<i64: 1, 128>}, {pipeline_mode = #tpu.pipeline_mode<synchronous>, transform_indices = @transform_8, window_bounds = array<i64: 1, 128>}, {transform_indices = @transform_9, window_bounds = array<i64: 1, 1>}, {transform_indices = @transform_10, window_bounds = array<i64: 128, 1>}]} {
    %c0 = arith.constant 0 : index
    %c0_0 = arith.constant 0 : index
    %0 = vector.load %arg1[%c0, %c0_0] : memref<128x128xf32, #tpu.memory_space<vmem>>, vector<128x128xf32>
    %c0_1 = arith.constant 0 : index
    %c0_2 = arith.constant 0 : index
    %1 = vector.load %arg2[%c0_1, %c0_2] : memref<1x128xf32, #tpu.memory_space<vmem>>, vector<1x128xf32>
    %2 = vector.broadcast %1 : vector<1x128xf32> to vector<128x128xf32>
    %3 = arith.mulf %0, %2 : vector<128x128xf32>
    %cst = arith.constant dense<0.000000e+00> : vector<128xf32>
    %4 = vector.multi_reduction <add>, %3, %cst [1] : vector<128x128xf32> to vector<128xf32>
    %5 = vector.shape_cast %4 : vector<128xf32> to vector<128x1xf32>
    %c0_3 = arith.constant 0 : index
    %c0_4 = arith.constant 0 : index
    %6 = vector.load %arg4[%c0_3, %c0_4] : memref<128x8xf32, #tpu.memory_space<vmem>>, vector<128x8xf32>
    %cst_5 = arith.constant dense<0.000000e+00> : vector<128x8xf32>
    %7 = tpu.matmul %0, %6, %cst_5 {dimension_numbers = #tpu.dot_dimension_numbers<[1], [0], [0], [1], [0, 0, 1, 1], [], []>} : vector<128x128xf32>, vector<128x8xf32>, vector<128x8xf32> -> vector<128x8xf32>
    %8 = arith.mulf %7, %7 : vector<128x8xf32>
    %cst_6 = arith.constant dense<0.000000e+00> : vector<128xf32>
    %9 = vector.multi_reduction <add>, %8, %cst_6 [1] : vector<128x8xf32> to vector<128xf32>
    %10 = vector.shape_cast %9 : vector<128xf32> to vector<128x1xf32>
    %11 = arith.mulf %0, %0 : vector<128x128xf32>
    %c0_7 = arith.constant 0 : index
    %c0_8 = arith.constant 0 : index
    %12 = vector.load %arg3[%c0_7, %c0_8] : memref<1x128xf32, #tpu.memory_space<vmem>>, vector<1x128xf32>
    %13 = vector.broadcast %12 : vector<1x128xf32> to vector<128x128xf32>
    %14 = arith.mulf %11, %13 : vector<128x128xf32>
    %cst_9 = arith.constant dense<0.000000e+00> : vector<128xf32>
    %15 = vector.multi_reduction <add>, %14, %cst_9 [1] : vector<128x128xf32> to vector<128xf32>
    %16 = vector.shape_cast %15 : vector<128xf32> to vector<128x1xf32>
    %17 = arith.subf %10, %16 : vector<128x1xf32>
    %cst_10 = arith.constant 5.000000e-01 : f32
    %18 = vector.broadcast %cst_10 : f32 to vector<128x1xf32>
    %19 = arith.mulf %18, %17 : vector<128x1xf32>
    %20 = arith.truncf %0 : vector<128x128xf32> to vector<128x128xbf16>
    %c0_11 = arith.constant 0 : index
    %c0_12 = arith.constant 0 : index
    %21 = vector.load %arg5[%c0_11, %c0_12] : memref<128x256xbf16, #tpu.memory_space<vmem>>, vector<128x256xbf16>
    %cst_13 = arith.constant dense<0.000000e+00> : vector<128x256xf32>
    %22 = tpu.matmul %20, %21, %cst_13 {dimension_numbers = #tpu.dot_dimension_numbers<[1], [0], [0], [1], [0, 0, 1, 1], [], []>} : vector<128x128xbf16>, vector<128x256xbf16>, vector<128x256xf32> -> vector<128x256xf32>
    %c0_14 = arith.constant 0 : index
    %c0_15 = arith.constant 0 : index
    %23 = vector.load %arg6[%c0_14, %c0_15] : memref<1x256xf32, #tpu.memory_space<vmem>>, vector<1x256xf32>
    %24 = vector.broadcast %23 : vector<1x256xf32> to vector<128x256xf32>
    %25 = arith.addf %22, %24 : vector<128x256xf32>
    %cst_16 = arith.constant 0.000000e+00 : f32
    %26 = vector.broadcast %cst_16 : f32 to vector<128x256xf32>
    %27 = arith.maximumf %25, %26 : vector<128x256xf32>
    %28 = arith.truncf %27 : vector<128x256xf32> to vector<128x256xbf16>
    %c0_17 = arith.constant 0 : index
    %c0_18 = arith.constant 0 : index
    %29 = vector.load %arg7[%c0_17, %c0_18] : memref<256x128xbf16, #tpu.memory_space<vmem>>, vector<256x128xbf16>
    %cst_19 = arith.constant dense<0.000000e+00> : vector<128x128xf32>
    %30 = tpu.matmul %28, %29, %cst_19 {dimension_numbers = #tpu.dot_dimension_numbers<[1], [0], [0], [1], [0, 0, 1, 1], [], []>} : vector<128x256xbf16>, vector<256x128xbf16>, vector<128x128xf32> -> vector<128x128xf32>
    %c0_20 = arith.constant 0 : index
    %c0_21 = arith.constant 0 : index
    %31 = vector.load %arg8[%c0_20, %c0_21] : memref<1x128xf32, #tpu.memory_space<vmem>>, vector<1x128xf32>
    %32 = vector.broadcast %31 : vector<1x128xf32> to vector<128x128xf32>
    %33 = arith.addf %30, %32 : vector<128x128xf32>
    %cst_22 = arith.constant 0.000000e+00 : f32
    %34 = vector.broadcast %cst_22 : f32 to vector<128x128xf32>
    %35 = arith.maximumf %33, %34 : vector<128x128xf32>
    %c0_23 = arith.constant 0 : index
    %c0_24 = arith.constant 0 : index
    %36 = vector.load %arg9[%c0_23, %c0_24] : memref<1x128xf32, #tpu.memory_space<vmem>>, vector<1x128xf32>
    %37 = vector.broadcast %36 : vector<1x128xf32> to vector<128x128xf32>
    %38 = arith.mulf %35, %37 : vector<128x128xf32>
    %cst_25 = arith.constant dense<0.000000e+00> : vector<128xf32>
    %39 = vector.multi_reduction <add>, %38, %cst_25 [1] : vector<128x128xf32> to vector<128xf32>
    %40 = vector.shape_cast %39 : vector<128xf32> to vector<128x1xf32>
    %41 = arith.addf %5, %19 : vector<128x1xf32>
    %42 = arith.addf %41, %40 : vector<128x1xf32>
    %c0_26 = arith.constant 0 : index
    %c0_27 = arith.constant 0 : index
    %43 = memref.load %arg10[%c0_26, %c0_27] : memref<1x1xf32, #tpu.memory_space<smem>>
    %44 = vector.broadcast %43 : f32 to vector<128x1xf32>
    %45 = arith.addf %42, %44 : vector<128x1xf32>
    %46 = arith.negf %45 : vector<128x1xf32>
    %47 = math.exp %46 : vector<128x1xf32>
    %cst_28 = arith.constant 1.000000e+00 : f32
    %48 = vector.broadcast %cst_28 : f32 to vector<128x1xf32>
    %49 = arith.addf %48, %47 : vector<128x1xf32>
    %50 = arith.divf %48, %49 : vector<128x1xf32>
    %c0_29 = arith.constant 0 : index
    %c0_30 = arith.constant 0 : index
    %51 = vector.load %arg11[%c0_29, %c0_30] : memref<128x1xf32, #tpu.memory_space<vmem>>, vector<128x1xf32>
    tpu.vector_store %arg11[%c0_29, %c0_30], %50 {strides = array<i32>} : memref<128x1xf32, #tpu.memory_space<vmem>>, vector<128x1xf32>,
    return
  }
  func.func @transform_0(%arg0: i32) -> (i32, i32) {
    %c0_i32 = arith.constant 0 : i32
    %c0_i32_0 = arith.constant 0 : i32
    return %arg0, %c0_i32 : i32, i32
  }
  func.func @transform_1(%arg0: i32) -> (i32, i32) {
    %c0_i32 = arith.constant 0 : i32
    %c0_i32_0 = arith.constant 0 : i32
    %c0_i32_1 = arith.constant 0 : i32
    return %c0_i32, %c0_i32_0 : i32, i32
  }
  func.func @transform_2(%arg0: i32) -> (i32, i32) {
    %c0_i32 = arith.constant 0 : i32
    %c0_i32_0 = arith.constant 0 : i32
    %c0_i32_1 = arith.constant 0 : i32
    return %c0_i32, %c0_i32_0 : i32, i32
  }
  func.func @transform_3(%arg0: i32) -> (i32, i32) {
    %c0_i32 = arith.constant 0 : i32
    %c0_i32_0 = arith.constant 0 : i32
    %c0_i32_1 = arith.constant 0 : i32
    return %c0_i32, %c0_i32_0 : i32, i32
  }
  func.func @transform_4(%arg0: i32) -> (i32, i32) {
    %c0_i32 = arith.constant 0 : i32
    %c0_i32_0 = arith.constant 0 : i32
    %c0_i32_1 = arith.constant 0 : i32
    return %c0_i32, %c0_i32_0 : i32, i32
  }
  func.func @transform_5(%arg0: i32) -> (i32, i32) {
    %c0_i32 = arith.constant 0 : i32
    %c0_i32_0 = arith.constant 0 : i32
    %c0_i32_1 = arith.constant 0 : i32
    return %c0_i32, %c0_i32_0 : i32, i32
  }
  func.func @transform_6(%arg0: i32) -> (i32, i32) {
    %c0_i32 = arith.constant 0 : i32
    %c0_i32_0 = arith.constant 0 : i32
    %c0_i32_1 = arith.constant 0 : i32
    return %c0_i32, %c0_i32_0 : i32, i32
  }
  func.func @transform_7(%arg0: i32) -> (i32, i32) {
    %c0_i32 = arith.constant 0 : i32
    %c0_i32_0 = arith.constant 0 : i32
    %c0_i32_1 = arith.constant 0 : i32
    return %c0_i32, %c0_i32_0 : i32, i32
  }
  func.func @transform_8(%arg0: i32) -> (i32, i32) {
    %c0_i32 = arith.constant 0 : i32
    %c0_i32_0 = arith.constant 0 : i32
    %c0_i32_1 = arith.constant 0 : i32
    return %c0_i32, %c0_i32_0 : i32, i32
  }
  func.func @transform_9(%arg0: i32) -> (i32, i32) {
    %c0_i32 = arith.constant 0 : i32
    %c0_i32_0 = arith.constant 0 : i32
    %c0_i32_1 = arith.constant 0 : i32
    return %c0_i32, %c0_i32_0 : i32, i32
  }
  func.func @transform_10(%arg0: i32) -> (i32, i32) {
    %c0_i32 = arith.constant 0 : i32
    %c0_i32_0 = arith.constant 0 : i32
    return %arg0, %c0_i32 : i32, i32
  }
}

</mosaic_0001>

<bundles_post_ra>
// kernel: tpu_custom_call.1
= control target key start
LH: loop header
LB: loop body
LE: loop exit
PB: predicated region body
PF: predicated region fallthrough
CT: control target
= control target key end

     0   :  { %s2869_s0 = inlined_call_operand.hbm [shape: f32[256,128], index: 0, kind: input, shape index: {}]   ;;  %s2870_s1 = inlined_call_operand.vmem [shape: f32[1,128], index: 1, kind: input, shape index: {}]   ;;  %s2871_s2 = inlined_call_operand.vmem [shape: f32[1,128], index: 2, kind: input, shape index: {}]   ;;  %s2872_s3 = inlined_call_operand.vmem [shape: f32[128,8], index: 3, kind: input, shape index: {}]   ;;  %s2873_s4 = inlined_call_operand.vmem [shape: bf16[128,256], index: 4, kind: input, shape index: {}]   ;;  %s2874_s5 = inlined_call_operand.vmem [shape: f32[1,256], index: 5, kind: input, shape index: {}]   ;;  %s2875_s6 = inlined_call_operand.hbm [shape: bf16[256,128], index: 6, kind: input, shape index: {}]   ;;  %s2876_s7 = inlined_call_operand.vmem [shape: f32[1,128], index: 7, kind: input, shape index: {}]   ;;  %s2877_s8 = inlined_call_operand.vmem [shape: f32[1,128], index: 8, kind: input, shape index: {}]   ;;  %s2878_s9 = inlined_call_operand.<no memory space> [shape: f32[1,1], index: 9, kind: input, shape index: {}]   ;;  %s2879_s10 = inlined_call_operand.vmem [shape: f32[256,1], index: 10, kind: output, shape index: {}]  }
   0x1   :  { %15 = sst [smem:[#allocation2]] %s2878_s9 }
   0x2   :  { %16 = vsyncpa [#allocation4], 0 }
   0x3   :  { %18 = vsyncpa [#allocation4 + $0x1], 0 }
   0x4   :  { %19 = vsyncpa [#allocation6], 0  ;;  %s2209_s15 = smov 0   ;;  %s2211_s16 = smov 0  }
   0x5   :  { %s2213_s17 = smov 0   ;;  %s2215_s18 = smov 0  }
   0x6 LB: > { %s2884_s9 = sadd.s32 4294967295, %s2142_s18   ;;  %p45_p0 = scmp.ne.s32.totalorder %s2134_s16, %s2130_s15  ;;  %s2142_s18 = sphi %s2215_s18, %s2897_s18   ;;  %s2138_s17 = sphi %s2213_s17, %s2900_s17   ;;  %s2134_s16 = sphi %s2211_s16, %s2899_s16   ;;  %s2130_s15 = sphi %s2209_s15, %s2898_s15  }
   0x7   : > { %p2231_p1 = scmp.eq.s32.totalorder %s2884_s9, 0  ;;  %p1621_p2 = scmp.ge.s32.totalorder %s2142_s18, 1 }
   0x8   : > { %p271_p3 = scmp.lt.s32.totalorder %s2142_s18, 3  ;;  %s2144_s22 = smov [#allocation5]  }
   0x9   : > { %s2887_s19 = scalar_select %p2231_p1, 1, 0 }
   0xa   : > { %p2239_p4 = por %p2231_p1, %p45_p0  ;;  %p2243_p5 = pnand %p1621_p2, %p271_p3 }
   0xb   : > { %s298_s23 = sshll.u32 %s2144_s22, 4  ;;  %s2256_s25 = sadd.s32 1, %s2142_s18   ;;  %s299_s23 = int_to_ptr.vmem [resolvable:$true] %s298_s23 }
   0xc   : > { %s2888_s20 = scalar_select %p2239_p4, 1, 0 }
   0xd   : > { %s2889_s21 = scalar_select %p2243_p5, 1, 0 }
   0xe   : > { %p1893_p6 = pneg %p2243_p5  ;;  %2891 = sst [smem:[#allocation9_spill]] %s2256_s25 }
   0xf   : > { %s32_s26 = sadd.s32 1, %s2138_s17  ;;  %s29_s27 = ssub.s32 %s2142_s18, %s2256_s25 }
  0x10   : > { %p2251_p7 = pnand %p1893_p6, %p2231_p1  ;;  %s2046_s30 = scalar_lea.hbm %s2875_s6, 2048 }
  0x11   : > { %p2047_p8 = scmp.ne.s32.totalorder %s2875_s6, %s2046_s30  ;;  %p2053_p12 = scmp.lt.u32.totalorder %s2046_s30, %s2875_s6 }
  0x12   : > { %p2048_p9 = pneg %p2251_p7 }
  0x14   : > { %p2049_p10 = pnand %p2048_p9, %p2047_p8 }
  0x16   : > { %p2050_p11 = pneg %p2049_p10 }
  0x18   : > { %p2055_p13 = pnand %p2053_p12, %p2050_p11 }
  0x1a   : > { %2058 = shalt.err (!%p2055_p13)
}
  0x1b   : > { %s2059_s15 = scalar_lea.vmem %s299_s23, 2048  ;;  %p2067_p6 = scmp.lt.s32.totalorder %s299_s23, %s299_s23 }
  0x1c   : > { %p2060_p0 = scmp.ne.s32.totalorder %s299_s23, %s2059_s15  ;;  %p2068_p1 = scmp.lt.s32.totalorder %s2059_s15, %s2059_s15 }
  0x1e   : > { %p2062_p2 = pnand %p2060_p0, %p2048_p9  ;;  %p2069_p4 = por %p2068_p1, %p2067_p6 }
  0x20   : > { %p2063_p3 = pneg %p2062_p2 }
  0x22   : > { %p2070_p5 = pnand %p2069_p4, %p2063_p3 }
  0x24   : > { %2073 = shalt.err (!%p2070_p5)
}
  0x25   : > { %s2145_s22 = smov 64   ;;  %s2146_s28 = smov 4  }
  0x26   : > { %1896 = dma.hbm_to_vmem [thread:$0]  (!%p2251_p7), %s2875_s6, 2048, %s299_s23, [#allocation6], %s2145_s22, %s2145_s22, %s2146_s28  }
  0x27   : > { %p30_p8 = scmp.eq.s32.totalorder %s29_s27, 0  ;;  %p39_p9 = scmp.ne.s32.totalorder %s2138_s17, %s2134_s16 }
  0x28   : > { %p40_p1 = scmp.eq.s32.totalorder %s2142_s18, 0  ;;  %p1902_p4 = scmp.lt.s32.totalorder %s2142_s18, 2 }
  0x29   : > { %s2282_s11 = scalar_select %p30_p8, %s2138_s17, %s32_s26  }
  0x2a   : > { %p41_p5 = por %p40_p1, %p39_p9  ;;  %s321_s12 = sand.u32 1, %s2138_s17  }
  0x2b   : > { %s1624_s13 = sshll.u32 %s321_s12, 7  ;;  %s1686_s14 = sshll.u32 %s2142_s18, 11 }
  0x2c   : > { %s2289_s25 = scalar_lea.hbm %s2869_s0, %s1686_s14  ;;  %s325_s23 = scalar_lea.vmem [#allocation3], %s1624_s13 }
  0x2d   : > { %s332_s24 = sshll.u32 %s325_s23, 4  ;;  %p2293_p7 = pnand %p1902_p4, %p41_p5  ;;  %s2291_s24 = int_to_ptr.vmem [resolvable:$true] %s332_s24 }
  0x2e   : > { %s2297_s27 = scalar_lea.sflag [#allocation4], %s321_s12  ;;  %s2074_s22 = scalar_lea.hbm %s2289_s25, 2048 }
  0x2f   : > { %p2075_p10 = scmp.ne.s32.totalorder %s2289_s25, %s2074_s22  ;;  %p2076_p11 = pneg %p2293_p7 }
  0x30   : > { %s2079_s29 = scalar_lea.hbm %s2869_s0, 4096  ;;  %p2080_p0 = scmp.lt.u32.totalorder %s2289_s25, %s2869_s0 }
  0x31   : > { %p2077_p12 = pnand %p2076_p11, %p2075_p10  ;;  %p2081_p2 = scmp.lt.u32.totalorder %s2079_s29, %s2074_s22 }
  0x32   : > { %p2083_p6 = scmp.lt.u32.totalorder %s2074_s22, %s2289_s25 }
  0x33   : > { %p2078_p13 = pneg %p2077_p12  ;;  %p2082_p3 = por %p2081_p2, %p2080_p0 }
  0x35   : > { %p2084_p8 = por %p2083_p6, %p2082_p3 }
  0x37   : > { %p2085_p9 = pnand %p2084_p8, %p2078_p13 }
  0x39   : > { %2088 = shalt.err (!%p2085_p9)
}
  0x3a   : > { %s2089_s12 = scalar_lea.vmem %s2291_s24, 2048  ;;  %s2147_s14 = smov [#allocation3]  }
  0x3b   : > { %p2090_p1 = scmp.ne.s32.totalorder %s2291_s24, %s2089_s12  ;;  %s2094_s15 = sshll.u32 %s2147_s14, 4  ;;  %s2095_s15 = int_to_ptr.vmem [resolvable:$false] %s2094_s15 }
  0x3c   : > { %s2096_s23 = scalar_lea.vmem %s2095_s15, 4096  ;;  %p2097_p10 = scmp.lt.s32.totalorder %s2291_s24, %s2095_s15 }
  0x3d   : > { %p2092_p4 = pnand %p2090_p1, %p2076_p11  ;;  %p2098_p12 = scmp.lt.s32.totalorder %s2096_s23, %s2089_s12 }
  0x3f   : > { %p2093_p5 = pneg %p2092_p4  ;;  %p2099_p0 = por %p2098_p12, %p2097_p10 }
  0x41   : > { %p2100_p2 = pnand %p2099_p0, %p2093_p5 }
  0x43   : > { %2103 = shalt.err (!%p2100_p2)
}
  0x44   : > { %s2148_s22 = smov 128   ;;  %s2149_s9 = smov 8  }
  0x45   : > { %1900 = dma.hbm_to_vmem [thread:$0]  (!%p2293_p7), %s2289_s25, 2048, %s2291_s24, %s2297_s27, %s2148_s22, %s2148_s22, %s2149_s9  }
  0x46   : > { %p2893_p11 = scmp.ne.s32.totalorder %s2889_s21, 0 }
  0x47   : > { %s346_s28 = sand.u32 (!%p2893_p11), 1, %s2134_s16   ;;  %p2894_p13 = scmp.ne.s32.totalorder (!%p2893_p11), %s2888_s20, 0 }
  0x48   : > { %344 = sbr.rel (%p2893_p11) target bundleno = 790 (0x316), region = 60  ;;  %s1628_s29 = sshll.u32 (!%p2893_p11), %s346_s28, 7 }
  0x49   : > { %s347_s30 = scalar_lea.sflag (!%p2893_p11), [#allocation4], %s346_s28  ;;  %s2328_s13 = scalar_lea.vmem (!%p2893_p11), [#allocation3], %s1628_s29 }
  0x4f   : > { %2121 = dma.done.wait (%p2894_p13), %s347_s30, 2048  }
  0x50   : > { %2123 = vsyncadd (%p2894_p13), %s347_s30, 4294965248  ;;  %p2895_p3 = scmp.ne.s32.totalorder %s2887_s19, 0 }
  0x52   : > { %2125 = dma.done.wait (%p2895_p3), [#allocation6], 2048  }
  0x53   : > { %2127 = vsyncadd (%p2895_p3), [#allocation6], 4294965248  ;;  %v2150_v0 = vmov 0   ;;  %v1942_v1 = vld [vmem:[%s2873_s4 + $0x4] ss:$8 sps:$4 sm:$0xff]   ;;  %v472_v15 = vld [vmem:[%s2872_s3 + $0x10] sm:$0xff] }
  0x54   : > { %947 = vmatprep.mubr.bf16.mxu1 %v2150_v0  ;;  %v1944_v2 = vld [vmem:[%s2873_s4] ss:$8 sps:$4 sm:$0xff]   ;;  %915 = vmatprep.subr.bf16.mxu1 %v1942_v1  ;;  %v1945_v3 = vld [vmem:[%s2873_s4 + $0x14] ss:$8 sps:$4 sm:$0xff]   ;;  %v1947_v4 = vld [vmem:[%s2873_s4 + $0x10] ss:$8 sps:$4 sm:$0xff]  }
  0x55   : > { %916 = vmatpush1.bf16.msra.mxu1 %v1944_v2  ;;  %v1948_v5 = vld [vmem:[%s2873_s4 + $0x24] ss:$8 sps:$4 sm:$0xff]   ;;  %v1950_v6 = vld [vmem:[%s2873_s4 + $0x20] ss:$8 sps:$4 sm:$0xff]   ;;  %v1951_v7 = vld [vmem:[%s2873_s4 + $0x34] ss:$8 sps:$4 sm:$0xff]  }
  0x56   : > { %917 = vmatprep.subr.bf16.mxu1 %v1945_v3  ;;  %v2361_v8 = vld [vmem:[%s2328_s13] sm:$0xff]  ;;  %v1953_v9 = vld [vmem:[%s2873_s4 + $0x30] ss:$8 sps:$4 sm:$0xff]   ;;  %v1957_v12 = vld [vmem:[%s2873_s4 + $0x54] ss:$8 sps:$4 sm:$0xff]   ;;  %vm647_vm0 = vcmask 64512  }
  0x57   : > { %1815 = vmatprep.mubr.f32.mxu0 %v2361_v8  ;;  %v1954_v10 = vld [vmem:[%s2873_s4 + $0x44] ss:$8 sps:$4 sm:$0xff]   ;;  %v1956_v11 = vld [vmem:[%s2873_s4 + $0x40] ss:$8 sps:$4 sm:$0xff]   ;;  %v473_v17 = vld [vmem:[%s2872_s3 + $0x18] sm:$0xff]  ;;  %s1411_s15 = sld [smem:[#allocation2]] }
  0x58   : > { %v470_v13 = vld [vmem:[%s2872_s3] sm:$0xff]  ;;  %v471_v14 = vld [vmem:[%s2872_s3 + $0x8] sm:$0xff]  ;;  %v1843_v18 = vpack.c.bf16 %v473_v17, %v472_v15  ;;  %v1959_v21 = vld [vmem:[%s2873_s4 + $0x50] ss:$8 sps:$4 sm:$0xff]   ;;  %s2896_s23 = sadd.s32 4294967295, %s2142_s18   ;;  %vm1525_vm1 = vcmask 7168  }
  0x59   : > { %918 = vmatpush1.bf16.msra.mxu1 %v1947_v4  ;;  %v1839_v16 = vpack.c.bf16 %v471_v14, %v470_v13  ;;  %v474_v19 = vld [vmem:[%s2872_s3 + $0x20] sm:$0xff]  ;;  %v475_v20 = vld [vmem:[%s2872_s3 + $0x28] sm:$0xff]  ;;  %v476_v24 = vld [vmem:[%s2872_s3 + $0x30] sm:$0xff]  ;;  %s1630_s22 = sshll.u32 %s2896_s23, 4 }
  0x5a   : > { %919 = vmatprep.subr.bf16.mxu1 %v1948_v5  ;;  %v1960_v22 = vld [vmem:[%s2873_s4 + $0x64] ss:$8 sps:$4 sm:$0xff]   ;;  %v1847_v23 = vpack.c.bf16 %v475_v20, %v474_v19  ;;  %v477_v25 = vld [vmem:[%s2872_s3 + $0x38] sm:$0xff]  ;;  %v1962_v26 = vld [vmem:[%s2873_s4 + $0x60] ss:$8 sps:$4 sm:$0xff]   ;;  %p393_p7 = scmp.lt.s32.totalorder %s1630_s22, 31 }
  0x5b   : > { %1840 = vmatprep.subr.bf16.mxu0 %v1839_v16  ;;  %v1963_v27 = vld [vmem:[%s2873_s4 + $0x74] ss:$8 sps:$4 sm:$0xff]   ;;  %v1965_v28 = vld [vmem:[%s2873_s4 + $0x70] ss:$8 sps:$4 sm:$0xff]   ;;  %v1851_v29 = vpack.c.bf16 %v477_v25, %v476_v24  ;;  %v478_v30 = vld [vmem:[%s2872_s3 + $0x40] sm:$0xff] }
  0x5c   : > { %1842 = vmatpush3.bf16.msra.mxu0 %v1839_v16  ;;  %v479_v31 = vld [vmem:[%s2872_s3 + $0x48] sm:$0xff]  ;;  %v480_v33 = vld [vmem:[%s2872_s3 + $0x50] sm:$0xff]  ;;  %v481_v35 = vld [vmem:[%s2872_s3 + $0x58] sm:$0xff]  ;;  %s2902_s22 = smov (!%p393_p7, %s1630_s22), 31 }
  0x5d   : > { %920 = vmatpush1.bf16.msra.mxu1 %v1950_v6  ;;  %1844 = vmatprep.subr.bf16.mxu0 %v1843_v18  ;;  %v2422_v32 = vld [vmem:[%s2328_s13 + $0x8] sm:$0xff]  ;;  %v1855_v34 = vpack.c.bf16 %v479_v31, %v478_v30  ;;  %v1966_v37 = vld [vmem:[#allocation5 + $0x40] sm:$0xff]   ;;  %v2439_v42 = vld [vmem:[%s2328_s13 + $0x10] sm:$0xff]  ;;  %v1859_v44 = vpack.c.bf16 %v481_v35, %v480_v33  ;;  %s1631_s18 = sshll.u32 %s2902_s22, 3 }
  0x5e   : > { %921 = vmatprep.subr.bf16.mxu1 %v1951_v7  ;;  %v799_v36 = vpack.c.bf16 %v2422_v32, %v2361_v8  ;;  %v482_v38 = vld [vmem:[%s2872_s3 + $0x60] sm:$0xff]  ;;  %v483_v39 = vld [vmem:[%s2872_s3 + $0x68] sm:$0xff]  ;;  %v2442_v43 = vld [vmem:[%s2328_s13 + $0x18] sm:$0xff]  ;;  %v697_v30 = vmul.f32 %v2422_v32, %v2422_v32  ;;  %v698_v33 = vmul.f32 %v2439_v42, %v2439_v42  ;;  %s2805_s29 = scalar_lea.vmem %s2879_s10, %s1631_s18 }
  0x5f   : > { %v1967_v40 = vld [vmem:[#allocation5] sm:$0xff]   ;;  %v1968_v41 = vld [vmem:[#allocation5 + $0x48] sm:$0xff]   ;;  %v1863_v45 = vpack.c.bf16 %v483_v39, %v482_v38  ;;  %v800_v47 = vpack.c.bf16 %v2442_v43, %v2439_v42  ;;  %v484_v48 = vld [vmem:[%s2872_s3 + $0x70] sm:$0xff]  ;;  %v699_v35 = vmul.f32 %v2442_v43, %v2442_v43 }
  0x60   : > { %1846 = vmatpush3.bf16.msra.mxu0 %v1843_v18  ;;  %v1969_v46 = vld [vmem:[#allocation5 + $0x8] sm:$0xff]   ;;  %v485_v49 = vld [vmem:[%s2872_s3 + $0x78] sm:$0xff]  ;;  %v1970_v50 = vld [vmem:[#allocation5 + $0x50] sm:$0xff]  }
  0x61   : > { %922 = vmatpush1.bf16.msra.mxu1 %v1953_v9  ;;  %1848 = vmatprep.subr.bf16.mxu0 %v1847_v23  ;;  %v1867_v51 = vpack.c.bf16 %v485_v49, %v484_v48  ;;  %v1971_v52 = vld [vmem:[#allocation5 + $0x10] sm:$0xff]   ;;  %v1972_v53 = vld [vmem:[#allocation5 + $0x58] sm:$0xff]   ;;  %v2455_v54 = vld [vmem:[%s2328_s13 + $0x20] sm:$0xff] }
  0x62   : > { %923 = vmatprep.subr.bf16.mxu1 %v1954_v10  ;;  %v2458_v55 = vld [vmem:[%s2328_s13 + $0x28] sm:$0xff]  ;;  %v1973_v56 = vld [vmem:[#allocation5 + $0x18] sm:$0xff]   ;;  %v1974_v58 = vld [vmem:[#allocation5 + $0x60] sm:$0xff]  }
  0x63   : > { %v801_v57 = vpack.c.bf16 %v2458_v55, %v2455_v54  ;;  %v2464_v59 = vld [vmem:[%s2328_s13 + $0x30] sm:$0xff]  ;;  %v2467_v60 = vld [vmem:[%s2328_s13 + $0x38] sm:$0xff]  ;;  %v1975_v61 = vld [vmem:[#allocation5 + $0x20] sm:$0xff]   ;;  %v701_v38 = vmul.f32 %v2458_v55, %v2458_v55 }
  0x64   : > { %1850 = vmatpush3.bf16.msra.mxu0 %v1847_v23  ;;  %v1976_v62 = vld [vmem:[#allocation5 + $0x68] sm:$0xff]   ;;  %v802_v63 = vpack.c.bf16 %v2467_v60, %v2464_v59  ;;  %v2477_v1 = vld [vmem:[%s2328_s13 + $0x40] sm:$0xff]  ;;  %v2490_v4 = vld [vmem:[%s2328_s13 + $0x50] sm:$0xff]  ;;  %v702_v39 = vmul.f32 %v2464_v59, %v2464_v59 }
  0x65   : > { %924 = vmatpush1.bf16.msra.mxu1 %v1956_v11  ;;  %1852 = vmatprep.subr.bf16.mxu0 %v1851_v29  ;;  %v2480_v2 = vld [vmem:[%s2328_s13 + $0x48] sm:$0xff]  ;;  %v2493_v5 = vld [vmem:[%s2328_s13 + $0x58] sm:$0xff]  ;;  %v2500_v7 = vld [vmem:[%s2328_s13 + $0x60] sm:$0xff] }
  0x66   : > { %925 = vmatprep.subr.bf16.mxu1 %v1957_v12  ;;  %v803_v3 = vpack.c.bf16 %v2480_v2, %v2477_v1  ;;  %v804_v6 = vpack.c.bf16 %v2493_v5, %v2490_v4  ;;  %v2505_v9 = vld [vmem:[%s2328_s13 + $0x68] sm:$0xff]  ;;  %v2509_v10 = vld [vmem:[%s2328_s13 + $0x70] sm:$0xff]  ;;  %v2516_v12 = vld [vmem:[%s2328_s13 + $0x78] sm:$0xff] }
  0x67   : > { %v805_v11 = vpack.c.bf16 %v2505_v9, %v2500_v7  ;;  %v806_v13 = vpack.c.bf16 %v2516_v12, %v2509_v10  ;;  %v1977_v14 = vld [vmem:[#allocation5 + $0x28] sm:$0xff]   ;;  %v1978_v15 = vld [vmem:[#allocation5 + $0x70] sm:$0xff]   ;;  %v1980_v17 = vld [vmem:[#allocation5 + $0x78] sm:$0xff]  }
  0x68   : > { %1854 = vmatpush3.bf16.msra.mxu0 %v1851_v29  ;;  %v1979_v16 = vld [vmem:[#allocation5 + $0x30] sm:$0xff]   ;;  %v1981_v18 = vld [vmem:[#allocation5 + $0x38] sm:$0xff]   ;;  %v1633_v31 = vld [vmem:[%s2871_s2] ss:$0 sm:$0xff] }
  0x69   : > { %926 = vmatpush1.bf16.msra.mxu1 %v1959_v21  ;;  %1856 = vmatprep.subr.bf16.mxu0 %v1855_v34 }
  0x6a   : > { %927 = vmatprep.subr.bf16.mxu1 %v1960_v22 }
  0x6c   : > { %1858 = vmatpush3.bf16.msra.mxu0 %v1855_v34  ;;  %v720_v34 = vmul.f32 %v1633_v31, %v697_v30 }
  0x6d   : > { %928 = vmatpush1.bf16.msra.mxu1 %v1962_v26  ;;  %1860 = vmatprep.subr.bf16.mxu0 %v1859_v44 }
  0x6e   : > { %929 = vmatprep.subr.bf16.mxu1 %v1963_v27  ;;  %v696_v27 = vmul.f32 %v2361_v8, %v2361_v8 }
  0x70   : > { %1862 = vmatpush3.bf16.msra.mxu0 %v1859_v44  ;;  %v725_v44 = vmul.f32 %v1633_v31, %v702_v39 }
  0x71   : > { %930 = vmatpush1.bf16.msra.mxu1 %v1965_v28  ;;  %1864 = vmatprep.subr.bf16.mxu0 %v1863_v45 }
  0x72   : > { %1871 = vmatprep.subr.bf16.mxu1 %v1966_v37 }
  0x74   : > { %948 = vmatmul.mubr.bf16.vlgmr.msra.gmra.mrb[0].mxu1 %v799_v36  ;;  %1866 = vmatpush3.bf16.msra.mxu0 %v1863_v45  ;;  %v721_v36 = vmul.f32 %v1633_v31, %v698_v33 }
  0x75   : > { %957 = vmatprep.mubr.bf16.mxu1 %v2150_v0  ;;  %1879 = vmatpush3.bf16.msra.mxu1 %v1967_v40 }
  0x76   : > { %1872 = vmatprep.subr.bf16.mxu1 %v1968_v41  ;;  %1868 = vmatprep.subr.bf16.mxu0 %v1867_v51 }
  0x78   : > { %1870 = vmatpush3.bf16.msra.mxu0 %v1867_v51 }
  0x79   : > { %1880 = vmatpush3.bf16.msra.mxu1 %v1969_v46  ;;  %1719 = vmatprep.subr.bf16.mxu0 %v1966_v37  ;;  %v722_v37 = vmul.f32 %v1633_v31, %v699_v35 }
  0x7a   : > { %1873 = vmatprep.subr.bf16.mxu1 %v1970_v50 }
  0x7b   : > { %1816 = vmatmul.mubr.f32.vlgmr.msra.gmra.mrb[0].mxu0 %v2422_v32 }
  0x7c   : > { %958 = vmatmul.mubr.bf16.gmra.mrb[4].mxu1 %v800_v47  ;;  %1818 = vmatprep.mubr.f32.mxu0 %v2439_v42  ;;  %v706_v47 = vmul.f32 %v2490_v4, %v2490_v4 }
  0x7d   : > { %967 = vmatprep.mubr.bf16.mxu1 %v2150_v0  ;;  %1881 = vmatpush3.bf16.msra.mxu1 %v1971_v52 }
  0x7e   : > { %1874 = vmatprep.subr.bf16.mxu1 %v1972_v53  ;;  %1720 = vmatpush3.bf16.msra.mxu0 %v1967_v40  ;;  %v729_v51 = vmul.f32 %v1633_v31, %v706_v47 }
  0x7f   : > { %1721 = vmatprep.subr.bf16.mxu0 %v1968_v41  ;;  %1819 = vmatmul.mubr.f32.gmra.mrb[2].mxu0 %v2442_v43  ;;  %v724_v41 = vmul.f32 %v1633_v31, %v701_v38 }
  0x80   : > { %1821 = vmatprep.mubr.f32.mxu0 %v2455_v54 }
  0x81   : > { %1882 = vmatpush3.bf16.msra.mxu1 %v1973_v56 }
  0x82   : > { %1875 = vmatprep.subr.bf16.mxu1 %v1974_v58  ;;  %1722 = vmatpush3.bf16.msra.mxu0 %v1969_v46  ;;  %v705_v46 = vmul.f32 %v2480_v2, %v2480_v2 }
  0x83   : > { %1723 = vmatprep.subr.bf16.mxu0 %v1970_v50  ;;  %1822 = vmatmul.mubr.f32.gmra.mrb[4].mxu0 %v2458_v55  ;;  %v707_v50 = vmul.f32 %v2493_v5, %v2493_v5 }
  0x84   : > { %968 = vmatmul.mubr.bf16.gmra.mrb[8].mxu1 %v801_v57  ;;  %1824 = vmatprep.mubr.f32.mxu0 %v2464_v59  ;;  %v728_v49 = vmul.f32 %v1633_v31, %v705_v46 }
  0x85   : > { %977 = vmatprep.mubr.bf16.mxu1 %v2150_v0  ;;  %1883 = vmatpush3.bf16.msra.mxu1 %v1975_v61 }
  0x86   : > { %1876 = vmatprep.subr.bf16.mxu1 %v1976_v62  ;;  %1724 = vmatpush3.bf16.msra.mxu0 %v1971_v52  ;;  %v730_v52 = vmul.f32 %v1633_v31, %v707_v50 }
  0x87   : > { %1725 = vmatprep.subr.bf16.mxu0 %v1972_v53  ;;  %1825 = vmatmul.mubr.f32.gmra.mrb[6].mxu0 %v2467_v60  ;;  %v708_v53 = vmul.f32 %v2500_v7, %v2500_v7 }
  0x88   : > { %1827 = vmatprep.mubr.f32.mxu0 %v2477_v1 }
  0x89   : > { %1884 = vmatpush3.bf16.msra.mxu1 %v1977_v14 }
  0x8a   : > { %1726 = vmatpush3.bf16.msra.mxu0 %v1973_v56  ;;  %1877 = vmatprep.subr.bf16.mxu1 %v1978_v15  ;;  %v731_v56 = vmul.f32 %v1633_v31, %v708_v53 }
  0x8b   : > { %1727 = vmatprep.subr.bf16.mxu0 %v1974_v58  ;;  %1828 = vmatmul.mubr.f32.gmra.mrb[8].mxu0 %v2480_v2  ;;  %v711_v58 = vmul.f32 %v2516_v12, %v2516_v12 }
  0x8c   : > { %978 = vmatmul.mubr.bf16.gmra.mrb[12].mxu1 %v802_v63  ;;  %1830 = vmatprep.mubr.f32.mxu0 %v2490_v4 }
  0x8d   : > { %987 = vmatprep.mubr.bf16.mxu1 %v2150_v0  ;;  %1885 = vmatpush3.bf16.msra.mxu1 %v1979_v16 }
  0x8e   : > { %1728 = vmatpush3.bf16.msra.mxu0 %v1975_v61  ;;  %1878 = vmatprep.subr.bf16.mxu1 %v1980_v17  ;;  %v734_v61 = vmul.f32 %v1633_v31, %v711_v58 }
  0x8f   : > { %1729 = vmatprep.subr.bf16.mxu0 %v1976_v62  ;;  %1831 = vmatmul.mubr.f32.gmra.mrb[10].mxu0 %v2493_v5 }
  0x90   : > { %1833 = vmatprep.mubr.f32.mxu0 %v2500_v7 }
  0x91   : > { %1886 = vmatpush3.bf16.msra.mxu1 %v1981_v18 }
  0x92   : > { %1730 = vmatpush3.bf16.msra.mxu0 %v1977_v14 }
  0x93   : > { %1834 = vmatmul.mubr.f32.gmra.mrb[12].mxu0 %v2505_v9  ;;  %1731 = vmatprep.subr.bf16.mxu0 %v1978_v15 }
  0x94   : > { %988 = vmatmul.mubr.bf16.gmra.mrb[16].mxu1 %v803_v3  ;;  %1836 = vmatprep.mubr.f32.mxu0 %v2509_v10  ;;  %v823_v3 = vld [vmem:[%s2874_s5] sm:$0x3] }
  0x95   : > { %997 = vmatprep.mubr.bf16.mxu1 %v2150_v0 }
  0x96   : > { %1732 = vmatpush3.bf16.msra.mxu0 %v1979_v16 }
  0x97   : > { %1837 = vmatmul.mubr.f32.gmra.mrb[14].mxu0 %v2516_v12  ;;  %1733 = vmatprep.subr.bf16.mxu0 %v1980_v17 }
  0x9a   : > { %1734 = vmatpush3.bf16.msra.mxu0 %v1981_v18 }
  0x9c   : > { %998 = vmatmul.mubr.bf16.gmra.mrb[20].mxu1 %v804_v6 }
  0x9d   : > { %1007 = vmatprep.mubr.bf16.mxu1 %v2150_v0 }
  0xa4   : > { %1008 = vmatmul.mubr.bf16.gmra.mrb[24].mxu1 %v805_v11 }
  0xa5   : > { %1017 = vmatprep.mubr.bf16.mxu1 %v2150_v0  ;;  %v2525_v0 = vld [vmem:[%s2870_s1] ss:$0 sm:$0xff] }
  0xa6   : > { %v422_v19 = vmul.f32 %v2525_v0, %v2361_v8  ;;  %v424_v20 = vmul.f32 %v2525_v0, %v2439_v42  ;;  %v423_v21 = vmul.f32 %v2525_v0, %v2422_v32  ;;  %v425_v22 = vmul.f32 %v2525_v0, %v2442_v43 }
  0xa7   : > { %v426_v23 = vmul.f32 %v2525_v0, %v2455_v54  ;;  %v427_v24 = vmul.f32 %v2525_v0, %v2458_v55  ;;  %v428_v25 = vmul.f32 %v2525_v0, %v2464_v59  ;;  %v429_v26 = vmul.f32 %v2525_v0, %v2467_v60 }
  0xa8   : > { %438 = vadd.xlane.f32.xlu0 %v422_v19  ;;  %442 = vadd.xlane.f32.xlu1 %v424_v20  ;;  %v430_v28 = vmul.f32 %v2525_v0, %v2477_v1  ;;  %v431_v29 = vmul.f32 %v2525_v0, %v2480_v2  ;;  %v719_v8 = vmul.f32 %v1633_v31, %v696_v27  ;;  %v825_v59 = vlaneseq }
  0xa9   : > { %v700_v32 = vmul.f32 %v2455_v54, %v2455_v54  ;;  %v703_v42 = vmul.f32 %v2467_v60, %v2467_v60  ;;  %v704_v43 = vmul.f32 %v2477_v1, %v2477_v1  ;;  %v709_v54 = vmul.f32 %v2505_v9, %v2505_v9 }
  0xaa   : > { %v710_v55 = vmul.f32 %v2509_v10, %v2509_v10  ;;  %v826_v62 = vshrl.u32 %v825_v59, 7  ;;  %v432_v63 = vmul.f32 %v2525_v0, %v2490_v4  ;;  %v433_v1 = vmul.f32 %v2525_v0, %v2493_v5 }
  0xab   : > { %v723_v40 = vmul.f32 %v1633_v31, %v700_v32  ;;  %v726_v45 = vmul.f32 %v1633_v31, %v703_v42  ;;  %v727_v48 = vmul.f32 %v1633_v31, %v704_v43  ;;  %v732_v57 = vmul.f32 %v1633_v31, %v709_v54 }
  0xac   : > { %1018 = vmatmul.mubr.bf16.gmra.mrb[28].mxu1 %v806_v13  ;;  %440 = vadd.xlane.f32.xlu0 %v423_v21  ;;  %v733_v60 = vmul.f32 %v1633_v31, %v710_v55  ;;  %v827_v2 = vsub.s32 0, %v826_v62  ;;  %v831_v6 = vsub.s32 1, %v826_v62  ;;  %v434_v11 = vmul.f32 %v2525_v0, %v2500_v7 }
  0xad   : > { %444 = vadd.xlane.f32.xlu1 %v425_v22  ;;  %v435_v13 = vmul.f32 %v2525_v0, %v2505_v9  ;;  %v436_v5 = vmul.f32 %v2525_v0, %v2509_v10  ;;  %v437_v15 = vmul.f32 %v2525_v0, %v2516_v12 }
  0xae   : > { %v2593_v14 = vrot.slane %v823_v3, %v827_v2  ;;  %v2595_v4 = vrot.slane %v823_v3, %v831_v6 }
  0xb0   : > { %446 = vadd.xlane.f32.xlu0 %v426_v23 }
  0xb1   : > { %448 = vadd.xlane.f32.xlu1 %v427_v24 }
  0xb4   : > { %450 = vadd.xlane.f32.xlu0 %v428_v25 }
  0xb5   : > { %452 = vadd.xlane.f32.xlu1 %v429_v26 }
  0xb8   : > { %454 = vadd.xlane.f32.xlu0 %v430_v28 }
  0xb9   : > { %456 = vadd.xlane.f32.xlu1 %v431_v29 }
  0xbc   : > { %735 = vadd.xlane.f32.xlu0 %v719_v8 }
  0xbd   : > { %737 = vadd.xlane.f32.xlu1 %v720_v34 }
  0xc0   : > { %739 = vadd.xlane.f32.xlu0 %v721_v36 }
  0xc1   : > { %741 = vadd.xlane.f32.xlu1 %v722_v37 }
  0xc4   : > { %743 = vadd.xlane.f32.xlu0 %v723_v40 }
  0xc5   : > { %745 = vadd.xlane.f32.xlu1 %v724_v41 }
  0xc8   : > { %747 = vadd.xlane.f32.xlu0 %v725_v44 }
  0xc9   : > { %749 = vadd.xlane.f32.xlu1 %v726_v45 }
  0xcc   : > { %751 = vadd.xlane.f32.xlu0 %v727_v48 }
  0xcd   : > { %753 = vadd.xlane.f32.xlu1 %v728_v49 }
  0xd0   : > { %755 = vadd.xlane.f32.xlu0 %v729_v51 }
  0xd1   : > { %757 = vadd.xlane.f32.xlu1 %v730_v52 }
  0xd4   : > { %759 = vadd.xlane.f32.xlu0 %v731_v56 }
  0xd5   : > { %761 = vadd.xlane.f32.xlu1 %v732_v57 }
  0xd8   : > { %763 = vadd.xlane.f32.xlu0 %v733_v60 }
  0xd9   : > { %765 = vadd.xlane.f32.xlu1 %v734_v61 }
  0xdc   : > { %458 = vadd.xlane.f32.xlu0 %v432_v63 }
  0xdd   : > { %460 = vadd.xlane.f32.xlu1 %v433_v1 }
  0xe0   : > { %462 = vadd.xlane.f32.xlu0 %v434_v11 }
  0xe1   : > { %464 = vadd.xlane.f32.xlu1 %v435_v13 }
  0xe4   : > { %466 = vadd.xlane.f32.xlu0 %v436_v5 }
  0xe5   : > { %468 = vadd.xlane.f32.xlu1 %v437_v15 }
 0x147   : > { %v949_v16 = vpop.f32.mrb[0].mxu1 }
 0x148   : > { %v950_v17 = vadd.f32 %v949_v16, %v2593_v14  ;;  %v951_v18 = vpop.f32.mrb[1].mxu1 }
 0x149   : > { %v952_v7 = vadd.f32 %v951_v18, %v2595_v4  ;;  %v953_v19 = vpop.f32.mrb[2].mxu1 }
 0x14a   : > { %v954_v9 = vadd.f32 %v953_v19, %v2593_v14  ;;  %v955_v20 = vpop.f32.mrb[3].mxu1  ;;  %v1028_v22 = vmax.f32 %v950_v17, 0.0 }
 0x14b   : > { %v956_v21 = vadd.f32 %v955_v20, %v2595_v4  ;;  %v1029_v10 = vmax.f32 %v952_v7, 0.0 }
 0x14c   : > { %v1030_v23 = vmax.f32 %v954_v9, 0.0 }
 0x14d   : > { %v1031_v24 = vmax.f32 %v956_v21, 0.0 }
 0x14e   : > { %v1060_v25 = vpack.c.bf16 %v1030_v23, %v1028_v22  ;;  %v1817_v41 = vpop.f32.mrb[0].mxu0 }
 0x14f   : > { %v1061_v12 = vpack.c.bf16 %v1031_v24, %v1029_v10  ;;  %v959_v0 = vpop.f32.mrb[4].mxu1  ;;  %v632_v44 = vmul.f32 %v1817_v41, %v1817_v41  ;;  %v552_v45 = vpop.f32.mrb[1].mxu0 }
 0x150   : > { %v960_v26 = vadd.f32 %v959_v0, %v2593_v14  ;;  %v961_v27 = vpop.f32.mrb[5].mxu1  ;;  %v631_v48 = vmul.f32 %v552_v45, %v552_v45 }
 0x151   : > { %v962_v28 = vadd.f32 %v961_v27, %v2595_v4  ;;  %v963_v29 = vpop.f32.mrb[6].mxu1  ;;  %1243 = vmatprep.mubr.bf16.mxu0 %v1061_v12  ;;  %v651_v50 = vsel %vm647_vm0, %v632_v44, 0.0 }
 0x152   : > { %v964_v30 = vadd.f32 %v963_v29, %v2593_v14  ;;  %v965_v31 = vpop.f32.mrb[7].mxu1  ;;  %1244 = vmatmul.mubr.bf16.vlgmr.msra.gmra.mrb[16].mxu0 %v1060_v25  ;;  %v1032_v8 = vmax.f32 %v960_v26, 0.0  ;;  %v1820_v53 = vpop.f32.mrb[2].mxu0  ;;  %v648_v54 = vsel %vm647_vm0, %v631_v48, 0.0  ;;  %652 = vadd.xlane.f32.xlu1 %v651_v50 }
 0x153   : > { %v966_v33 = vadd.f32 %v965_v31, %v2595_v4  ;;  %v1033_v35 = vmax.f32 %v962_v28, 0.0  ;;  %v634_v57 = vmul.f32 %v1820_v53, %v1820_v53  ;;  %v562_v58 = vpop.f32.mrb[3].mxu0  ;;  %649 = vadd.xlane.f32.xlu0 %v648_v54 }
 0x154   : > { %v1034_v34 = vmax.f32 %v964_v30, 0.0  ;;  %v633_v60 = vmul.f32 %v562_v58, %v562_v58 }
 0x155   : > { %v1035_v36 = vmax.f32 %v966_v33, 0.0  ;;  %v657_v63 = vsel %vm647_vm0, %v634_v57, 0.0 }
 0x156   : > { %v1062_v37 = vpack.c.bf16 %v1034_v34, %v1032_v8  ;;  %v654_v3 = vsel %vm647_vm0, %v633_v60, 0.0  ;;  %v1823_v6 = vpop.f32.mrb[4].mxu0  ;;  %658 = vadd.xlane.f32.xlu1 %v657_v63 }
 0x157   : > { %v1063_v32 = vpack.c.bf16 %v1035_v36, %v1033_v35  ;;  %v969_v38 = vpop.f32.mrb[8].mxu1  ;;  %655 = vadd.xlane.f32.xlu0 %v654_v3  ;;  %v636_v5 = vmul.f32 %v1823_v6, %v1823_v6  ;;  %v572_v15 = vpop.f32.mrb[5].mxu0 }
 0x158   : > { %v970_v39 = vadd.f32 %v969_v38, %v2593_v14  ;;  %v971_v40 = vpop.f32.mrb[9].mxu1  ;;  %v635_v18 = vmul.f32 %v572_v15, %v572_v15 }
 0x159   : > { %v972_v42 = vadd.f32 %v971_v40, %v2595_v4  ;;  %v973_v43 = vpop.f32.mrb[10].mxu1  ;;  %1251 = vmatprep.mubr.bf16.mxu0 %v1063_v32  ;;  %v663_v19 = vsel %vm647_vm0, %v636_v5, 0.0 }
 0x15a   : > { %v974_v46 = vadd.f32 %v973_v43, %v2593_v14  ;;  %v975_v47 = vpop.f32.mrb[11].mxu1  ;;  %1252 = vmatmul.mubr.bf16.gmra.mrb[20].mxu0 %v1062_v37  ;;  %v1036_v51 = vmax.f32 %v970_v39, 0.0  ;;  %v1826_v21 = vpop.f32.mrb[6].mxu0  ;;  %664 = vadd.xlane.f32.xlu1 %v663_v19  ;;  %v660_v22 = vsel %vm647_vm0, %v635_v18, 0.0 }
 0x15b   : > { %v976_v49 = vadd.f32 %v975_v47, %v2595_v4  ;;  %v1037_v55 = vmax.f32 %v972_v42, 0.0  ;;  %v638_v24 = vmul.f32 %v1826_v21, %v1826_v21  ;;  %v582_v25 = vpop.f32.mrb[7].mxu0  ;;  %661 = vadd.xlane.f32.xlu0 %v660_v22 }
 0x15c   : > { %v1038_v52 = vmax.f32 %v974_v46, 0.0  ;;  %v637_v0 = vmul.f32 %v582_v25, %v582_v25 }
 0x15d   : > { %v1039_v56 = vmax.f32 %v976_v49, 0.0  ;;  %v669_v28 = vsel %vm647_vm0, %v638_v24, 0.0 }
 0x15e   : > { %v1064_v59 = vpack.c.bf16 %v1038_v52, %v1036_v51  ;;  %v1829_v31 = vpop.f32.mrb[8].mxu0  ;;  %670 = vadd.xlane.f32.xlu1 %v669_v28  ;;  %v666_v33 = vsel %vm647_vm0, %v637_v0, 0.0 }
 0x15f   : > { %v1065_v61 = vpack.c.bf16 %v1039_v56, %v1037_v55  ;;  %v979_v62 = vpop.f32.mrb[12].mxu1  ;;  %v640_v35 = vmul.f32 %v1829_v31, %v1829_v31  ;;  %v592_v36 = vpop.f32.mrb[9].mxu0  ;;  %667 = vadd.xlane.f32.xlu0 %v666_v33 }
 0x160   : > { %v980_v1 = vadd.f32 %v979_v62, %v2593_v14  ;;  %v981_v2 = vpop.f32.mrb[13].mxu1  ;;  %v639_v38 = vmul.f32 %v592_v36, %v592_v36 }
 0x161   : > { %v982_v11 = vadd.f32 %v981_v2, %v2595_v4  ;;  %v983_v13 = vpop.f32.mrb[14].mxu1  ;;  %1259 = vmatprep.mubr.bf16.mxu0 %v1065_v61  ;;  %v675_v40 = vsel %vm647_vm0, %v640_v35, 0.0 }
 0x162   : > { %v984_v16 = vadd.f32 %v983_v13, %v2593_v14  ;;  %v985_v17 = vpop.f32.mrb[15].mxu1  ;;  %1260 = vmatmul.mubr.bf16.gmra.mrb[24].mxu0 %v1064_v59  ;;  %v1040_v9 = vmax.f32 %v980_v1, 0.0  ;;  %676 = vadd.xlane.f32.xlu1 %v675_v40  ;;  %v672_v43 = vsel %vm647_vm0, %v639_v38, 0.0  ;;  %v1832_v44 = vpop.f32.mrb[10].mxu0 }
 0x163   : > { %v986_v7 = vadd.f32 %v985_v17, %v2595_v4  ;;  %v1041_v23 = vmax.f32 %v982_v11, 0.0  ;;  %673 = vadd.xlane.f32.xlu0 %v672_v43  ;;  %v642_v47 = vmul.f32 %v1832_v44, %v1832_v44  ;;  %v602_v48 = vpop.f32.mrb[11].mxu0 }
 0x164   : > { %v1042_v20 = vmax.f32 %v984_v16, 0.0  ;;  %v641_v50 = vmul.f32 %v602_v48, %v602_v48 }
 0x165   : > { %v1043_v10 = vmax.f32 %v986_v7, 0.0  ;;  %v681_v53 = vsel %vm647_vm0, %v642_v47, 0.0  ;;  %v2651_v47 = vpop.xlane.xlu1 %442 }
 0x166   : > { %v1066_v12 = vpack.c.bf16 %v1042_v20, %v1040_v9  ;;  %v1835_v56 = vpop.f32.mrb[12].mxu0  ;;  %682 = vadd.xlane.f32.xlu1 %v681_v53  ;;  %v678_v57 = vsel %vm647_vm0, %v641_v50, 0.0 }
 0x167   : > { %v1067_v26 = vpack.c.bf16 %v1043_v10, %v1041_v23  ;;  %v989_v27 = vpop.f32.mrb[16].mxu1  ;;  %v644_v60 = vmul.f32 %v1835_v56, %v1835_v56  ;;  %v612_v61 = vpop.f32.mrb[13].mxu0  ;;  %679 = vadd.xlane.f32.xlu0 %v678_v57 }
 0x168   : > { %v990_v29 = vadd.f32 %v989_v27, %v2593_v14  ;;  %v991_v30 = vpop.f32.mrb[17].mxu1  ;;  %v643_v1 = vmul.f32 %v612_v61, %v612_v61 }
 0x169   : > { %v992_v8 = vadd.f32 %v991_v30, %v2595_v4  ;;  %v993_v34 = vpop.f32.mrb[18].mxu1  ;;  %1267 = vmatprep.mubr.bf16.mxu0 %v1067_v26  ;;  %v687_v3 = vsel %vm647_vm0, %v644_v60, 0.0 }
 0x16a   : > { %v994_v37 = vadd.f32 %v993_v34, %v2593_v14  ;;  %v995_v32 = vpop.f32.mrb[19].mxu1  ;;  %1268 = vmatmul.mubr.bf16.gmra.mrb[28].mxu0 %v1066_v12  ;;  %v1044_v41 = vmax.f32 %v990_v29, 0.0  ;;  %v1838_v13 = vpop.f32.mrb[14].mxu0  ;;  %688 = vadd.xlane.f32.xlu1 %v687_v3  ;;  %v684_v5 = vsel %vm647_vm0, %v643_v1, 0.0 }
 0x16b   : > { %v996_v39 = vadd.f32 %v995_v32, %v2595_v4  ;;  %v1045_v45 = vmax.f32 %v992_v8, 0.0  ;;  %v646_v17 = vmul.f32 %v1838_v13, %v1838_v13  ;;  %v622_v18 = vpop.f32.mrb[15].mxu0  ;;  %685 = vadd.xlane.f32.xlu0 %v684_v5 }
 0x16c   : > { %v1046_v42 = vmax.f32 %v994_v37, 0.0  ;;  %v645_v19 = vmul.f32 %v622_v18, %v622_v18 }
 0x16d   : > { %v1047_v46 = vmax.f32 %v996_v39, 0.0  ;;  %v693_v21 = vsel %vm647_vm0, %v646_v17, 0.0 }
 0x16e   : > { %v1068_v49 = vpack.c.bf16 %v1046_v42, %v1044_v41  ;;  %694 = vadd.xlane.f32.xlu1 %v693_v21  ;;  %v690_v10 = vsel %vm647_vm0, %v645_v19, 0.0 }
 0x16f   : > { %v1069_v51 = vpack.c.bf16 %v1047_v46, %v1045_v45  ;;  %v999_v52 = vpop.f32.mrb[20].mxu1  ;;  %691 = vadd.xlane.f32.xlu0 %v690_v10  ;;  %v2649_v46 = vpop.xlane.xlu0 %438 }
 0x170   : > { %v1000_v54 = vadd.f32 %v999_v52, %v2593_v14  ;;  %v1001_v55 = vpop.f32.mrb[21].mxu1 }
 0x171   : > { %v1002_v58 = vadd.f32 %v1001_v55, %v2595_v4  ;;  %v1003_v59 = vpop.f32.mrb[22].mxu1  ;;  %1275 = vmatprep.mubr.bf16.mxu0 %v1069_v51 }
 0x172   : > { %v1004_v62 = vadd.f32 %v1003_v59, %v2593_v14  ;;  %v1005_v63 = vpop.f32.mrb[23].mxu1  ;;  %1276 = vmatmul.mubr.bf16.gmra.mrb[32].mxu0 %v1068_v49  ;;  %v1048_v6 = vmax.f32 %v1000_v54, 0.0  ;;  %v2655_v49 = vpop.xlane.xlu1 %444 }
 0x173   : > { %v1006_v2 = vadd.f32 %v1005_v63, %v2595_v4  ;;  %v1049_v15 = vmax.f32 %v1002_v58, 0.0  ;;  %v2653_v48 = vpop.xlane.xlu0 %440 }
 0x174   : > { %v1050_v11 = vmax.f32 %v1004_v62, 0.0 }
 0x175   : > { %v1051_v16 = vmax.f32 %v1006_v2, 0.0 }
 0x176   : > { %v1070_v7 = vpack.c.bf16 %v1050_v11, %v1048_v6  ;;  %v2659_v50 = vpop.xlane.xlu1 %448 }
 0x177   : > { %v1071_v9 = vpack.c.bf16 %v1051_v16, %v1049_v15  ;;  %v1009_v20 = vpop.f32.mrb[24].mxu1 }
 0x178   : > { %v1010_v22 = vadd.f32 %v1009_v20, %v2593_v14  ;;  %v1011_v23 = vpop.f32.mrb[25].mxu1 }
 0x179   : > { %v1012_v24 = vadd.f32 %v1011_v23, %v2595_v4  ;;  %v1013_v25 = vpop.f32.mrb[26].mxu1  ;;  %1283 = vmatprep.mubr.bf16.mxu0 %v1071_v9 }
 0x17a   : > { %v1014_v12 = vadd.f32 %v1013_v25, %v2593_v14  ;;  %v1015_v0 = vpop.f32.mrb[27].mxu1  ;;  %1284 = vmatmul.mubr.bf16.gmra.mrb[36].mxu0 %v1070_v7  ;;  %v1052_v27 = vmax.f32 %v1010_v22, 0.0  ;;  %v2663_v51 = vpop.xlane.xlu1 %452 }
 0x17b   : > { %v1016_v26 = vadd.f32 %v1015_v0, %v2595_v4  ;;  %v1053_v29 = vmax.f32 %v1012_v24, 0.0 }
 0x17c   : > { %v1054_v28 = vmax.f32 %v1014_v12, 0.0 }
 0x17d   : > { %v1055_v30 = vmax.f32 %v1016_v26, 0.0 }
 0x17e   : > { %v1072_v31 = vpack.c.bf16 %v1054_v28, %v1052_v27  ;;  %v2667_v53 = vpop.xlane.xlu1 %456 }
 0x17f   : > { %v1073_v33 = vpack.c.bf16 %v1055_v30, %v1053_v29  ;;  %v1019_v8 = vpop.f32.mrb[28].mxu1 }
 0x180   : > { %v1020_v34 = vadd.f32 %v1019_v8, %v2593_v14  ;;  %v1021_v35 = vpop.f32.mrb[29].mxu1 }
 0x181   : > { %v1022_v36 = vadd.f32 %v1021_v35, %v2595_v4  ;;  %v1023_v37 = vpop.f32.mrb[30].mxu1  ;;  %1291 = vmatprep.mubr.bf16.mxu1 %v1073_v33 }
 0x182   : > { %v1024_v32 = vadd.f32 %v1023_v37, %v2593_v14  ;;  %v1025_v38 = vpop.f32.mrb[31].mxu1  ;;  %1292 = vmatmul.mubr.bf16.vlgmr.msra.gmra.mrb[32].mxu1 %v1072_v31  ;;  %v1056_v40 = vmax.f32 %v1020_v34, 0.0  ;;  %v2657_v14 = vpop.xlane.xlu0 %446 }
 0x183   : > { %v1026_v39 = vadd.f32 %v1025_v38, %v2595_v4  ;;  %v1057_v42 = vmax.f32 %v1022_v36, 0.0  ;;  %v2671_v55 = vpop.xlane.xlu1 %737 }
 0x184   : > { %v1058_v41 = vmax.f32 %v1024_v32, 0.0  ;;  %v2712_v32 = vld [vmem:[%s2876_s7] ss:$0 sm:$0xff] }
 0x185   : > { %v1059_v43 = vmax.f32 %v1026_v39, 0.0 }
 0x186   : > { %v1074_v44 = vpack.c.bf16 %v1058_v41, %v1056_v40  ;;  %v2661_v4 = vpop.xlane.xlu0 %450 }
 0x187   : > { %v1075_v45 = vpack.c.bf16 %v1059_v43, %v1057_v42  ;;  %v2675_v57 = vpop.xlane.xlu1 %741 }
 0x189   : > { %1299 = vmatprep.mubr.bf16.mxu1 %v1075_v45 }
 0x18a   : > { %1300 = vmatmul.mubr.bf16.gmra.mrb[36].mxu1 %v1074_v44  ;;  %v2665_v52 = vpop.xlane.xlu0 %454 }
 0x18b   : > { %v2679_v59 = vpop.xlane.xlu1 %745 }
 0x18e   : > { %v2669_v54 = vpop.xlane.xlu0 %735 }
 0x18f   : > { %v2683_v61 = vpop.xlane.xlu1 %749 }
 0x192   : > { %v2673_v56 = vpop.xlane.xlu0 %739 }
 0x193   : > { %v2687_v63 = vpop.xlane.xlu1 %753 }
 0x196   : > { %v2677_v58 = vpop.xlane.xlu0 %743 }
 0x197   : > { %v758_v2 = vpop.xlane.xlu1 %757 }
 0x19a   : > { %v2681_v60 = vpop.xlane.xlu0 %747 }
 0x19b   : > { %v762_v6 = vpop.xlane.xlu1 %761 }
 0x19e   : > { %v2685_v62 = vpop.xlane.xlu0 %751 }
 0x19f   : > { %v766_v13 = vpop.xlane.xlu1 %765 }
 0x1a2   : > { %v756_v1 = vpop.xlane.xlu0 %755 }
 0x1a3   : > { %v461_v5 = vpop.xlane.xlu1 %460 }
 0x1a6   : > { %v760_v3 = vpop.xlane.xlu0 %759 }
 0x1a7   : > { %v465_v16 = vpop.xlane.xlu1 %464 }
 0x1aa   : > { %v764_v11 = vpop.xlane.xlu0 %763 }
 0x1ab   : > { %v469_v18 = vpop.xlane.xlu1 %468 }
 0x1ae   : > { %v459_v15 = vpop.xlane.xlu0 %458 }
 0x1b2   : > { %v463_v17 = vpop.xlane.xlu0 %462 }
 0x1b6   : > { %v467_v7 = vpop.xlane.xlu0 %466 }
 0x1df   : > { %v2689_v19 = vpop.xlane.xlu1 %652 }
 0x1e0   : > { %v2691_v9 = vpop.xlane.xlu0 %649 }
 0x1e3   : > { %v2693_v20 = vpop.xlane.xlu1 %658 }
 0x1e4   : > { %v2695_v21 = vpop.xlane.xlu0 %655 }
 0x1e7   : > { %v2697_v22 = vpop.xlane.xlu1 %664 }
 0x1e8   : > { %v2699_v23 = vpop.xlane.xlu0 %661 }
 0x1eb   : > { %v2701_v10 = vpop.xlane.xlu1 %670 }
 0x1ec   : > { %v2703_v24 = vpop.xlane.xlu0 %667 }
 0x1ef   : > { %v2705_v25 = vpop.xlane.xlu1 %676 }
 0x1f0   : > { %v2707_v12 = vpop.xlane.xlu0 %673 }
 0x1f3   : > { %v683_v0 = vpop.xlane.xlu1 %682 }
 0x1f4   : > { %v680_v26 = vpop.xlane.xlu0 %679  ;;  %v778_v29 = vsub.f32 %v683_v0, %v758_v2  ;;  %v2722_v0 = vld [vmem:[%s2877_s8] ss:$0 sm:$0xff] }
 0x1f5   : > { %v777_v30 = vsub.f32 %v680_v26, %v756_v1 }
 0x1f6   : > { %v794_v33 = vmul.f32 0.5, %v778_v29 }
 0x1f7   : > { %v689_v27 = vpop.xlane.xlu1 %688  ;;  %v793_v8 = vmul.f32 0.5, %v777_v30 }
 0x1f8   : > { %v686_v28 = vpop.xlane.xlu0 %685  ;;  %v780_v34 = vsub.f32 %v689_v27, %v762_v6  ;;  %v2716_v1 = vadd.f32 %v794_v33, %v461_v5 }
 0x1f9   : > { %v779_v31 = vsub.f32 %v686_v28, %v760_v3  ;;  %v2714_v45 = vadd.f32 %v793_v8, %v459_v15 }
 0x1fa   : > { %v796_v44 = vmul.f32 0.5, %v780_v34 }
 0x1fb   : > { %v695_v35 = vpop.xlane.xlu1 %694  ;;  %v795_v39 = vmul.f32 0.5, %v779_v31 }
 0x1fc   : > { %v692_v36 = vpop.xlane.xlu0 %691  ;;  %v782_v40 = vsub.f32 %v695_v35, %v766_v13  ;;  %v2727_v15 = vadd.f32 %v796_v44, %v465_v16 }
 0x1fd   : > { %v781_v41 = vsub.f32 %v692_v36, %v764_v11  ;;  %v2725_v28 = vadd.f32 %v795_v39, %v463_v17 }
 0x1fe   : > { %v798_v26 = vmul.f32 0.5, %v782_v40 }
 0x1ff   : > { %v797_v27 = vmul.f32 0.5, %v781_v41 }
 0x200   : > { %v2733_v36 = vadd.f32 %v798_v26, %v469_v18 }
 0x201   : > { %v2731_v35 = vadd.f32 %v797_v27, %v467_v7 }
 0x225   : > { %v1735_v37 = vpop.f32.mrb[16].mxu0 }
 0x226   : > { %v1736_v38 = vpop.f32.mrb[17].mxu0 }
 0x227   : > { %v1737_v42 = vadd.f32 %v1736_v38, %v1735_v37  ;;  %v1738_v43 = vpop.f32.mrb[18].mxu0 }
 0x228   : > { %v1739_v2 = vpop.f32.mrb[19].mxu0 }
 0x229   : > { %v1246_v3 = vadd.f32 %v1737_v42, %v2712_v32  ;;  %v1740_v6 = vadd.f32 %v1739_v2, %v1738_v43 }
 0x22b   : > { %v1308_v13 = vmax.f32 %v1246_v3, 0.0  ;;  %v1249_v11 = vadd.f32 %v1740_v6, %v2712_v32 }
 0x22d   : > { %v1309_v5 = vmax.f32 %v1249_v11, 0.0  ;;  %v1741_v29 = vpop.f32.mrb[20].mxu0  ;;  %v1331_v30 = vmul.f32 %v2722_v0, %v1308_v13 }
 0x22e   : > { %v1742_v31 = vpop.f32.mrb[21].mxu0 }
 0x22f   : > { %v1743_v33 = vadd.f32 %v1742_v31, %v1741_v29  ;;  %v1744_v8 = vpop.f32.mrb[22].mxu0  ;;  %1347 = vadd.xlane.f32.xlu0 %v1331_v30  ;;  %v1332_v34 = vmul.f32 %v2722_v0, %v1309_v5 }
 0x230   : > { %v1745_v37 = vpop.f32.mrb[23].mxu0 }
 0x231   : > { %v1254_v17 = vadd.f32 %v1743_v33, %v2712_v32  ;;  %v1746_v38 = vadd.f32 %v1745_v37, %v1744_v8  ;;  %1349 = vadd.xlane.f32.xlu1 %v1332_v34 }
 0x233   : > { %v1310_v16 = vmax.f32 %v1254_v17, 0.0  ;;  %v1257_v39 = vadd.f32 %v1746_v38, %v2712_v32 }
 0x235   : > { %v1311_v40 = vmax.f32 %v1257_v39, 0.0  ;;  %v1747_v41 = vpop.f32.mrb[24].mxu0  ;;  %v1333_v42 = vmul.f32 %v2722_v0, %v1310_v16 }
 0x236   : > { %v1748_v43 = vpop.f32.mrb[25].mxu0 }
 0x237   : > { %v1749_v44 = vadd.f32 %v1748_v43, %v1747_v41  ;;  %v1750_v2 = vpop.f32.mrb[26].mxu0  ;;  %1351 = vadd.xlane.f32.xlu0 %v1333_v42  ;;  %v1334_v7 = vmul.f32 %v2722_v0, %v1311_v40 }
 0x238   : > { %v1751_v18 = vpop.f32.mrb[27].mxu0 }
 0x239   : > { %v1262_v3 = vadd.f32 %v1749_v44, %v2712_v32  ;;  %v1752_v6 = vadd.f32 %v1751_v18, %v1750_v2  ;;  %1353 = vadd.xlane.f32.xlu1 %v1334_v7 }
 0x23b   : > { %v1312_v26 = vmax.f32 %v1262_v3, 0.0  ;;  %v1265_v27 = vadd.f32 %v1752_v6, %v2712_v32 }
 0x23d   : > { %v1313_v13 = vmax.f32 %v1265_v27, 0.0  ;;  %v1753_v11 = vpop.f32.mrb[28].mxu0  ;;  %v1335_v5 = vmul.f32 %v2722_v0, %v1312_v26 }
 0x23e   : > { %v1754_v29 = vpop.f32.mrb[29].mxu0 }
 0x23f   : > { %v1755_v30 = vadd.f32 %v1754_v29, %v1753_v11  ;;  %v1756_v31 = vpop.f32.mrb[30].mxu0  ;;  %1355 = vadd.xlane.f32.xlu0 %v1335_v5  ;;  %v1336_v33 = vmul.f32 %v2722_v0, %v1313_v13 }
 0x240   : > { %v1757_v8 = vpop.f32.mrb[31].mxu0 }
 0x241   : > { %v1270_v34 = vadd.f32 %v1755_v30, %v2712_v32  ;;  %v1758_v37 = vadd.f32 %v1757_v8, %v1756_v31  ;;  %1357 = vadd.xlane.f32.xlu1 %v1336_v33 }
 0x243   : > { %v1314_v17 = vmax.f32 %v1270_v34, 0.0  ;;  %v1273_v38 = vadd.f32 %v1758_v37, %v2712_v32 }
 0x245   : > { %v1315_v16 = vmax.f32 %v1273_v38, 0.0  ;;  %v1759_v39 = vpop.f32.mrb[32].mxu0  ;;  %v1337_v40 = vmul.f32 %v2722_v0, %v1314_v17 }
 0x246   : > { %v1760_v41 = vpop.f32.mrb[33].mxu0 }
 0x247   : > { %v1761_v42 = vadd.f32 %v1760_v41, %v1759_v39  ;;  %v1762_v43 = vpop.f32.mrb[34].mxu0  ;;  %1359 = vadd.xlane.f32.xlu0 %v1337_v40  ;;  %v1338_v44 = vmul.f32 %v2722_v0, %v1315_v16 }
 0x248   : > { %v1763_v2 = vpop.f32.mrb[35].mxu0 }
 0x249   : > { %v1278_v7 = vadd.f32 %v1761_v42, %v2712_v32  ;;  %v1764_v18 = vadd.f32 %v1763_v2, %v1762_v43  ;;  %1361 = vadd.xlane.f32.xlu1 %v1338_v44 }
 0x24b   : > { %v1316_v3 = vmax.f32 %v1278_v7, 0.0  ;;  %v1281_v6 = vadd.f32 %v1764_v18, %v2712_v32 }
 0x24d   : > { %v1317_v26 = vmax.f32 %v1281_v6, 0.0  ;;  %v1765_v27 = vpop.f32.mrb[36].mxu0  ;;  %v1339_v13 = vmul.f32 %v2722_v0, %v1316_v3 }
 0x24e   : > { %v1766_v11 = vpop.f32.mrb[37].mxu0 }
 0x24f   : > { %v1767_v5 = vadd.f32 %v1766_v11, %v1765_v27  ;;  %v1768_v29 = vpop.f32.mrb[38].mxu0  ;;  %1363 = vadd.xlane.f32.xlu0 %v1339_v13  ;;  %v1340_v30 = vmul.f32 %v2722_v0, %v1317_v26 }
 0x250   : > { %v1769_v31 = vpop.f32.mrb[39].mxu0 }
 0x251   : > { %v1286_v33 = vadd.f32 %v1767_v5, %v2712_v32  ;;  %v1770_v8 = vadd.f32 %v1769_v31, %v1768_v29  ;;  %1365 = vadd.xlane.f32.xlu1 %v1340_v30 }
 0x253   : > { %v1318_v34 = vmax.f32 %v1286_v33, 0.0  ;;  %v1289_v37 = vadd.f32 %v1770_v8, %v2712_v32 }
 0x255   : > { %v1319_v17 = vmax.f32 %v1289_v37, 0.0  ;;  %v1771_v38 = vpop.f32.mrb[32].mxu1  ;;  %v1341_v16 = vmul.f32 %v2722_v0, %v1318_v34 }
 0x256   : > { %v1772_v39 = vpop.f32.mrb[33].mxu1 }
 0x257   : > { %v1773_v40 = vadd.f32 %v1772_v39, %v1771_v38  ;;  %v1774_v41 = vpop.f32.mrb[34].mxu1  ;;  %1367 = vadd.xlane.f32.xlu0 %v1341_v16  ;;  %v1342_v42 = vmul.f32 %v2722_v0, %v1319_v17  ;;  %v767_v38 = vsub.f32 %v2691_v9, %v2669_v54  ;;  %v768_v16 = vsub.f32 %v2689_v19, %v2671_v55 }
 0x258   : > { %v1775_v43 = vpop.f32.mrb[35].mxu1 }
 0x259   : > { %v1294_v44 = vadd.f32 %v1773_v40, %v2712_v32  ;;  %v1776_v2 = vadd.f32 %v1775_v43, %v1774_v41  ;;  %1369 = vadd.xlane.f32.xlu1 %v1342_v42  ;;  %v783_v39 = vmul.f32 0.5, %v767_v38  ;;  %v784_v40 = vmul.f32 0.5, %v768_v16 }
 0x25a   : > { %v769_v41 = vsub.f32 %v2695_v21, %v2673_v56  ;;  %v2770_v42 = vstv %s1411_s15 }
 0x25b   : > { %v1320_v7 = vmax.f32 %v1294_v44, 0.0  ;;  %v1297_v18 = vadd.f32 %v1776_v2, %v2712_v32  ;;  %v1380_v54 = vadd.f32 %v784_v40, %v2653_v48  ;;  %v772_v48 = vsub.f32 %v2697_v22, %v2679_v59 }
 0x25c   : > { %v785_v2 = vmul.f32 0.5, %v769_v41 }
 0x25d   : > { %v1321_v3 = vmax.f32 %v1297_v18, 0.0  ;;  %v1777_v6 = vpop.f32.mrb[36].mxu1  ;;  %v1343_v26 = vmul.f32 %v2722_v0, %v1320_v7 }
 0x25e   : > { %v1778_v27 = vpop.f32.mrb[37].mxu1 }
 0x25f   : > { %v1779_v13 = vadd.f32 %v1778_v27, %v1777_v6  ;;  %v1780_v11 = vpop.f32.mrb[38].mxu1  ;;  %1371 = vadd.xlane.f32.xlu0 %v1343_v26  ;;  %v1344_v5 = vmul.f32 %v2722_v0, %v1321_v3 }
 0x260   : > { %v1781_v29 = vpop.f32.mrb[39].mxu1 }
 0x261   : > { %v1302_v30 = vadd.f32 %v1779_v13, %v2712_v32  ;;  %v1782_v31 = vadd.f32 %v1781_v29, %v1780_v11  ;;  %1373 = vadd.xlane.f32.xlu1 %v1344_v5  ;;  %v788_v5 = vmul.f32 0.5, %v772_v48 }
 0x263   : > { %v1322_v33 = vmax.f32 %v1302_v30, 0.0  ;;  %v1305_v8 = vadd.f32 %v1782_v31, %v2712_v32  ;;  %v1379_v32 = vadd.f32 %v783_v39, %v2649_v46  ;;  %v771_v46 = vsub.f32 %v2699_v23, %v2677_v58 }
 0x264   : > { %v774_v30 = vsub.f32 %v2701_v10, %v2683_v61  ;;  %v775_v61 = vsub.f32 %v2707_v12, %v2685_v62 }
 0x265   : > { %v1323_v34 = vmax.f32 %v1305_v8, 0.0  ;;  %v1345_v37 = vmul.f32 %v2722_v0, %v1322_v33  ;;  %v787_v27 = vmul.f32 0.5, %v771_v46  ;;  %v1384_v33 = vadd.f32 %v788_v5, %v2659_v50 }
 0x267   : > { %1375 = vadd.xlane.f32.xlu0 %v1345_v37  ;;  %v1346_v17 = vmul.f32 %v2722_v0, %v1323_v34  ;;  %v770_v0 = vsub.f32 %v2693_v20, %v2675_v57  ;;  %v1381_v57 = vadd.f32 %v785_v2, %v2651_v47  ;;  %v773_v47 = vsub.f32 %v2703_v24, %v2681_v60 }
 0x268   : > { %v1383_v22 = vadd.f32 %v787_v27, %v2657_v14  ;;  %v790_v14 = vmul.f32 0.5, %v774_v30  ;;  %v791_v2 = vmul.f32 0.5, %v775_v61 }
 0x269   : > { %1377 = vadd.xlane.f32.xlu1 %v1346_v17  ;;  %v786_v7 = vmul.f32 0.5, %v770_v0  ;;  %v789_v17 = vmul.f32 0.5, %v773_v47 }
 0x26a   : > { %v1386_v0 = vadd.f32 %v790_v14, %v2663_v51 }
 0x26b   : > { %v1382_v6 = vadd.f32 %v786_v7, %v2655_v49  ;;  %v1385_v10 = vadd.f32 %v789_v17, %v2661_v4  ;;  %v1387_v7 = vadd.f32 %v791_v2, %v2665_v52 }
 0x2bc   : > { %v1348_v43 = vpop.xlane.xlu0 %1347 }
 0x2bd   : > { %v1395_v44 = vadd.f32 %v1379_v32, %v1348_v43  ;;  %v776_v32 = vsub.f32 %v2705_v25, %v2687_v63 }
 0x2be   : > { %v1350_v9 = vpop.xlane.xlu1 %1349 }
 0x2bf   : > { %v1413_v55 = vadd.f32 %v2770_v42, %v1395_v44  ;;  %v1396_v19 = vadd.f32 %v1380_v54, %v1350_v9  ;;  %v792_v63 = vmul.f32 0.5, %v776_v32 }
 0x2c1   : > { %v1668_v18 = vmul.f32 -1.442695, %v1413_v55  ;;  %v1414_v56 = vadd.f32 %v2770_v42, %v1396_v19 }
 0x2c3   : > { %1982 = vpow2.f32 %v1668_v18  ;;  %v1669_v21 = vmul.f32 -1.442695, %v1414_v56 }
 0x2c4   : > { %v1352_v20 = vpop.xlane.xlu0 %1351 }
 0x2c5   : > { %1984 = vpow2.f32 %v1669_v21  ;;  %v1397_v3 = vadd.f32 %v1381_v57, %v1352_v20  ;;  %v1388_v57 = vadd.f32 %v792_v63, %v2667_v53 }
 0x2c6   : > { %v1354_v26 = vpop.xlane.xlu1 %1353 }
 0x2c7   : > { %v1415_v13 = vadd.f32 %v2770_v42, %v1397_v3  ;;  %v1398_v11 = vadd.f32 %v1382_v6, %v1354_v26 }
 0x2c9   : > { %v1670_v58 = vmul.f32 -1.442695, %v1415_v13  ;;  %v1416_v23 = vadd.f32 %v2770_v42, %v1398_v11 }
 0x2cb   : > { %1986 = vpow2.f32 %v1670_v58  ;;  %v1671_v59 = vmul.f32 -1.442695, %v1416_v23 }
 0x2cc   : > { %v1356_v29 = vpop.xlane.xlu0 %1355 }
 0x2cd   : > { %v1983_v49 = vpop.eup %1982  ;;  %1988 = vpow2.f32 %v1671_v59  ;;  %v1399_v31 = vadd.f32 %v1383_v22, %v1356_v29 }
 0x2ce   : > { %v1477_v8 = vadd.f32 1.0, %v1983_v49  ;;  %v1358_v34 = vpop.xlane.xlu1 %1357 }
 0x2cf   : > { %v1985_v37 = vpop.eup %1984  ;;  %v1417_v60 = vadd.f32 %v2770_v42, %v1399_v31  ;;  %v1400_v24 = vadd.f32 %v1384_v33, %v1358_v34 }
 0x2d0   : > { %1990 = vrcp.f32 %v1477_v8  ;;  %v1478_v38 = vadd.f32 1.0, %v1985_v37 }
 0x2d1   : > { %v1672_v16 = vmul.f32 -1.442695, %v1417_v60  ;;  %v1418_v39 = vadd.f32 %v2770_v42, %v1400_v24 }
 0x2d2   : > { %1992 = vrcp.f32 %v1478_v38 }
 0x2d3   : > { %1994 = vpow2.f32 %v1672_v16  ;;  %v1673_v50 = vmul.f32 -1.442695, %v1418_v39 }
 0x2d4   : > { %v1360_v40 = vpop.xlane.xlu0 %1359 }
 0x2d5   : > { %v1987_v41 = vpop.eup %1986  ;;  %1996 = vpow2.f32 %v1673_v50  ;;  %v1401_v43 = vadd.f32 %v1385_v10, %v1360_v40 }
 0x2d6   : > { %v1479_v44 = vadd.f32 1.0, %v1987_v41  ;;  %v1362_v54 = vpop.xlane.xlu1 %1361 }
 0x2d7   : > { %v1989_v9 = vpop.eup %1988  ;;  %v1419_v62 = vadd.f32 %v2770_v42, %v1401_v43  ;;  %v1402_v12 = vadd.f32 %v1386_v0, %v1362_v54 }
 0x2d8   : > { %1998 = vrcp.f32 %v1479_v44  ;;  %v1480_v4 = vadd.f32 1.0, %v1989_v9 }
 0x2d9   : > { %v1674_v25 = vmul.f32 -1.442695, %v1419_v62  ;;  %v1420_v51 = vadd.f32 %v2770_v42, %v1402_v12 }
 0x2da   : > { %v1991_v55 = vpop.eup %1990  ;;  %2000 = vrcp.f32 %v1480_v4 }
 0x2db   : > { %1526 = vst.msk [vmem:[%s2805_s29] sm:$0xff] %vm1525_vm1, %v1991_v55  ;;  %2002 = vpow2.f32 %v1674_v25  ;;  %v1675_v19 = vmul.f32 -1.442695, %v1420_v51 }
 0x2dc   : > { %v1993_v18 = vpop.eup %1992  ;;  %v1364_v56 = vpop.xlane.xlu0 %1363 }
 0x2dd   : > { %v1995_v46 = vpop.eup %1994  ;;  %1527 = vst.msk [vmem:[%s2805_s29 + $0x8] sm:$0xff] %vm1525_vm1, %v1993_v18  ;;  %2004 = vpow2.f32 %v1675_v19  ;;  %v1403_v21 = vadd.f32 %v1387_v7, %v1364_v56 }
 0x2de   : > { %v1481_v20 = vadd.f32 1.0, %v1995_v46  ;;  %v1366_v48 = vpop.xlane.xlu1 %1365 }
 0x2df   : > { %v1997_v3 = vpop.eup %1996  ;;  %v1421_v6 = vadd.f32 %v2770_v42, %v1403_v21  ;;  %v1404_v26 = vadd.f32 %v1388_v57, %v1366_v48 }
 0x2e0   : > { %2006 = vrcp.f32 %v1481_v20  ;;  %v1482_v27 = vadd.f32 1.0, %v1997_v3 }
 0x2e1   : > { %v1676_v52 = vmul.f32 -1.442695, %v1421_v6  ;;  %v1422_v13 = vadd.f32 %v2770_v42, %v1404_v26 }
 0x2e2   : > { %v1999_v11 = vpop.eup %1998  ;;  %2008 = vrcp.f32 %v1482_v27 }
 0x2e3   : > { %1528 = vst.msk [vmem:[%s2805_s29 + $0x10] sm:$0xff] %vm1525_vm1, %v1999_v11  ;;  %2010 = vpow2.f32 %v1676_v52  ;;  %v1677_v5 = vmul.f32 -1.442695, %v1422_v13 }
 0x2e4   : > { %v2001_v58 = vpop.eup %2000  ;;  %v1368_v53 = vpop.xlane.xlu0 %1367 }
 0x2e5   : > { %v2003_v23 = vpop.eup %2002  ;;  %1529 = vst.msk [vmem:[%s2805_s29 + $0x18] sm:$0xff] %vm1525_vm1, %v2001_v58  ;;  %2012 = vpow2.f32 %v1677_v5  ;;  %v1405_v47 = vadd.f32 %v2714_v45, %v1368_v53 }
 0x2e6   : > { %v1483_v59 = vadd.f32 1.0, %v2003_v23  ;;  %v1370_v22 = vpop.xlane.xlu1 %1369 }
 0x2e7   : > { %v2005_v29 = vpop.eup %2004  ;;  %v1423_v49 = vadd.f32 %v2770_v42, %v1405_v47  ;;  %v1406_v30 = vadd.f32 %v2716_v1, %v1370_v22 }
 0x2e8   : > { %2014 = vrcp.f32 %v1483_v59  ;;  %v1484_v31 = vadd.f32 1.0, %v2005_v29 }
 0x2e9   : > { %v1678_v33 = vmul.f32 -1.442695, %v1423_v49  ;;  %v1424_v8 = vadd.f32 %v2770_v42, %v1406_v30 }
 0x2ea   : > { %v2007_v34 = vpop.eup %2006  ;;  %2016 = vrcp.f32 %v1484_v31 }
 0x2eb   : > { %1530 = vst.msk [vmem:[%s2805_s29 + $0x20] sm:$0xff] %vm1525_vm1, %v2007_v34  ;;  %2018 = vpow2.f32 %v1678_v33  ;;  %v1679_v37 = vmul.f32 -1.442695, %v1424_v8 }
 0x2ec   : > { %v2009_v45 = vpop.eup %2008  ;;  %v1372_v17 = vpop.xlane.xlu0 %1371 }
 0x2ed   : > { %v2011_v60 = vpop.eup %2010  ;;  %1531 = vst.msk [vmem:[%s2805_s29 + $0x28] sm:$0xff] %vm1525_vm1, %v2009_v45  ;;  %2020 = vpow2.f32 %v1679_v37  ;;  %v1407_v1 = vadd.f32 %v2725_v28, %v1372_v17 }
 0x2ee   : > { %v1485_v24 = vadd.f32 1.0, %v2011_v60  ;;  %v1374_v38 = vpop.xlane.xlu1 %1373 }
 0x2ef   : > { %v2013_v14 = vpop.eup %2012  ;;  %v1425_v16 = vadd.f32 %v2770_v42, %v1407_v1  ;;  %v1408_v39 = vadd.f32 %v2727_v15, %v1374_v38 }
 0x2f0   : > { %2022 = vrcp.f32 %v1485_v24  ;;  %v1486_v61 = vadd.f32 1.0, %v2013_v14 }
 0x2f1   : > { %v1680_v50 = vmul.f32 -1.442695, %v1425_v16  ;;  %v1426_v10 = vadd.f32 %v2770_v42, %v1408_v39 }
 0x2f2   : > { %v2015_v40 = vpop.eup %2014  ;;  %2024 = vrcp.f32 %v1486_v61 }
 0x2f3   : > { %1532 = vst.msk [vmem:[%s2805_s29 + $0x30] sm:$0xff] %vm1525_vm1, %v2015_v40  ;;  %2026 = vpow2.f32 %v1680_v50  ;;  %v1681_v41 = vmul.f32 -1.442695, %v1426_v10 }
 0x2f4   : > { %v2017_v28 = vpop.eup %2016  ;;  %v1376_v32 = vpop.xlane.xlu0 %1375 }
 0x2f5   : > { %v2019_v43 = vpop.eup %2018  ;;  %1533 = vst.msk [vmem:[%s2805_s29 + $0x38] sm:$0xff] %vm1525_vm1, %v2017_v28  ;;  %2028 = vpow2.f32 %v1681_v41  ;;  %v1409_v15 = vadd.f32 %v2731_v35, %v1376_v32 }
 0x2f6   : > { %v1487_v0 = vadd.f32 1.0, %v2019_v43  ;;  %v1378_v44 = vpop.xlane.xlu1 %1377 }
 0x2f7   : > { %v2021_v54 = vpop.eup %2020  ;;  %v1427_v9 = vadd.f32 %v2770_v42, %v1409_v15  ;;  %v1410_v2 = vadd.f32 %v2733_v36, %v1378_v44 }
 0x2f8   : > { %2030 = vrcp.f32 %v1487_v0  ;;  %v1488_v62 = vadd.f32 1.0, %v2021_v54 }
 0x2f9   : > { %v1682_v12 = vmul.f32 -1.442695, %v1427_v9  ;;  %v1428_v4 = vadd.f32 %v2770_v42, %v1410_v2 }
 0x2fa   : > { %v2023_v63 = vpop.eup %2022  ;;  %2032 = vrcp.f32 %v1488_v62 }
 0x2fb   : > { %1534 = vst.msk [vmem:[%s2805_s29 + $0x40] sm:$0xff] %vm1525_vm1, %v2023_v63  ;;  %2034 = vpow2.f32 %v1682_v12  ;;  %v1683_v35 = vmul.f32 -1.442695, %v1428_v4 }
 0x2fc   : > { %v2025_v25 = vpop.eup %2024 }
 0x2fd   : > { %v2027_v51 = vpop.eup %2026  ;;  %1535 = vst.msk [vmem:[%s2805_s29 + $0x48] sm:$0xff] %vm1525_vm1, %v2025_v25  ;;  %2036 = vpow2.f32 %v1683_v35 }
 0x2fe   : > { %v1489_v55 = vadd.f32 1.0, %v2027_v51 }
 0x2ff   : > { %v2029_v36 = vpop.eup %2028 }
 0x300   : > { %2038 = vrcp.f32 %v1489_v55  ;;  %v1490_v19 = vadd.f32 1.0, %v2029_v36 }
 0x302   : > { %v2031_v42 = vpop.eup %2030  ;;  %2040 = vrcp.f32 %v1490_v19 }
 0x303   : > { %1536 = vst.msk [vmem:[%s2805_s29 + $0x50] sm:$0xff] %vm1525_vm1, %v2031_v42 }
 0x304   : > { %v2033_v7 = vpop.eup %2032 }
 0x305   : > { %v2035_v18 = vpop.eup %2034  ;;  %1537 = vst.msk [vmem:[%s2805_s29 + $0x58] sm:$0xff] %vm1525_vm1, %v2033_v7 }
 0x306   : > { %v1491_v56 = vadd.f32 1.0, %v2035_v18 }
 0x307   : > { %v2037_v46 = vpop.eup %2036 }
 0x308   : > { %2042 = vrcp.f32 %v1491_v56  ;;  %v1492_v21 = vadd.f32 1.0, %v2037_v46 }
 0x30a   : > { %v2039_v57 = vpop.eup %2038  ;;  %2044 = vrcp.f32 %v1492_v21 }
 0x30b   : > { %1538 = vst.msk [vmem:[%s2805_s29 + $0x60] sm:$0xff] %vm1525_vm1, %v2039_v57 }
 0x30c   : > { %v2041_v20 = vpop.eup %2040 }
 0x30d   : > { %1539 = vst.msk [vmem:[%s2805_s29 + $0x68] sm:$0xff] %vm1525_vm1, %v2041_v20 }
 0x312   : > { %v2043_v48 = vpop.eup %2042 }
 0x313   : > { %1540 = vst.msk [vmem:[%s2805_s29 + $0x70] sm:$0xff] %vm1525_vm1, %v2043_v48 }
 0x314   : > { %v2045_v3 = vpop.eup %2044 }
 0x315   : > { %1541 = vst.msk [vmem:[%s2805_s29 + $0x78] sm:$0xff] %vm1525_vm1, %v2045_v3 }
 0x316 PF: > { %s2897_s18 = sld [smem:[#allocation9_spill]]  ;;  %s2898_s15 = smov %s2134_s16 }
 0x317   : > { %s2899_s16 = smov %s2138_s17  ;;  %s2900_s17 = smov %s2282_s11 }
 0x31c   : > { %p22_p6 = scmp.ge.s32.totalorder %s2897_s18, 4  }
 0x31e   :  { %24 = sbr.rel (!%p22_p6) target bundleno = 6 (0x6), region = 104 }
 0x325   :  { %1564 = vsyncpa [#allocation4], 1 }
 0x326   :  { %1566 = vsyncpa [#allocation4 + $0x1], 1 }
 0x327   :  { %1567 = vsyncpa [#allocation6], 1 }

</bundles_post_ra>
